<compile_context>
chip_gen: v6e
topology: v6e:2x2x1
jax: 0.10.0
libtpu: 0.0.40
codegen_flags: <defaults>
</compile_context>

<pallas_src>
import jax
import jax.numpy as jnp
from jax import lax
from jax.experimental import pallas as pl
from jax.experimental.pallas import tpu as pltpu

# ---- problem sizes (small, consistent with the module) ----------------------
B = 2        # batch
L = 8        # raw_text sequence length
LA = 4       # target (aspect) sequence length
E = 32       # embedding dim
H = 16       # LSTM hidden dim  (bi-LSTM output width = 2H = 32)
G = 4 * H    # gate width per direction (i|f|g|o)
GF = 16 * H  # fused gate width across the 4 chains
C3 = 50      # Conv1d out channels
NL = 3       # num_labels
VOCAB = 64   # synthetic vocab size


# ----------------------------- Pallas kernel ---------------------------------
def _tnet_kernel(xbig_ref, mstep_ref, posw_ref,
                 wih_ref, whh_ref, blstm_ref,
                 wfc1_ref, bfc1_ref,
                 wconv_ref, bconv_ref,
                 wfc_ref, bfc_ref,
                 out_ref):
    f32 = jnp.float32
    bf16 = jnp.bfloat16

    # ---- hoisted input projection for all 4 chains & all positions ----------
    # x_big[:, t, :] = [feat[t] | asp[t] | feat[L-1-t] | asp[L-1-t]]  (B, L, 4E)
    # wih_fused is block-structured so column layout of the result is the fused
    # gate layout [i(4H) | f(4H) | o(4H) | g(4H)], chains [1f,2f,1b,2b] inside.
    xbig = xbig_ref[...].astype(bf16)                                  # (B, L, 4E)
    wih_b = jnp.broadcast_to(wih_ref[...].astype(bf16), (B, 4 * E, GF))
    xpre = lax.dot_general(xbig, wih_b, (((2,), (1,)), ((0,), (0,))),
                           preferred_element_type=f32) + blstm_ref[...]  # (B, L, 16H)

    mstep = mstep_ref[...]                                             # (B, L, 4H)
    whh_bf = whh_ref[...].astype(bf16)                                 # (4H, 16H) block-diag

    # ---- fixed-trip, unrolled recurrence: ONE fused cell / step --------------
    hcat = jnp.zeros((B, 4 * H), f32)   # chains [1f | 2f | 1b | 2b]
    ccat = jnp.zeros((B, 4 * H), f32)
    o1f = [None] * L
    o1b = [None] * L
    o2f = [None] * LA
    o2b = [None] * LA

    for t in range(L):
        g = xpre[:, t, :] + jnp.dot(hcat.astype(bf16), whh_bf,
                                    preferred_element_type=f32)        # (B, 16H)
        sig = jax.nn.sigmoid(g[:, 0:12 * H])                           # i|f|o  (B, 12H)
        gg = jnp.tanh(g[:, 12 * H:16 * H])                             # g      (B, 4H)
        i_g = sig[:, 0:4 * H]
        f_g = sig[:, 4 * H:8 * H]
        o_g = sig[:, 8 * H:12 * H]
        m = mstep[:, t, :]                                             # (B, 4H) {0,1}
        ccat = m * (f_g * ccat + i_g * gg)        # padded steps keep zero state
        hcat = m * (o_g * jnp.tanh(ccat))         # padded outputs stay exactly zero

        o1f[t] = hcat[:, 0:H]                     # lstm1 fwd, position t
        o1b[L - 1 - t] = hcat[:, 2 * H:3 * H]     # lstm1 bwd, position L-1-t
        if t < LA:
            o2f[t] = hcat[:, H:2 * H]             # lstm2 fwd, position t
        if L - 1 - t < LA:
            o2b[L - 1 - t] = hcat[:, 3 * H:4 * H]  # lstm2 bwd, position L-1-t

    v = jnp.concatenate([jnp.stack(o1f, axis=1), jnp.stack(o1b, axis=1)], axis=2)  # (B, L, 2H)
    e = jnp.concatenate([jnp.stack(o2f, axis=1), jnp.stack(o2b, axis=1)], axis=2)  # (B, LA, 2H)

    # ---- two CPT layers (batched, unrolled) ----------------------------------
    wfc1_b = jnp.broadcast_to(wfc1_ref[...].astype(bf16), (B, 4 * H, 2 * H))
    bfc1 = bfc1_ref[...]            # (1, 2H)
    posw = posw_ref[...]            # (B, L, 1)
    eb = e.astype(bf16)

    for _ in range(2):
        # a[b, j, t] = <e[b, j], v[b, t]>  == bmm(e^T, v) in PyTorch NCW layout
        a = lax.dot_general(eb, v.astype(bf16), (((2,), (2,)), ((0,), (0,))),
                            preferred_element_type=f32)                 # (B, LA, L)
        a = jnp.exp(a - jnp.max(a, axis=1, keepdims=True))              # softmax over aspect dim
        a = a * pl.reciprocal(jnp.sum(a, axis=1, keepdims=True), approx=True)
        # mid[b, t, :] = sum_j a[b, j, t] * e[b, j, :]   (== bmm(e, a)^T)
        mid = lax.dot_general(a.astype(bf16), eb, (((1,), (1,)), ((0,), (0,))),
                              preferred_element_type=f32)               # (B, L, 2H)
        cat = jnp.concatenate([mid, v], axis=2).astype(bf16)            # (B, L, 4H)
        mid = jnp.maximum(
            lax.dot_general(cat, wfc1_b, (((2,), (1,)), ((0,), (0,))),
                            preferred_element_type=f32) + bfc1, 0.0)
        v = posw * (mid + v)                                            # residual + position weighting

    # ---- Conv1d(2H->C3, k=3, pad=1) folded into one (L, 6H)@(6H, C3) matmul --
    zrow = jnp.zeros((B, 1, 2 * H), f32)
    cat3 = jnp.concatenate([
        jnp.concatenate([zrow, v[:, :L - 1, :]], axis=1),   # x[t-1]  (tap 0)
        v,                                                  # x[t]    (tap 1)
        jnp.concatenate([v[:, 1:, :], zrow], axis=1),       # x[t+1]  (tap 2)
    ], axis=2).astype(bf16)                                 # (B, L, 6H)
    wconv_b = jnp.broadcast_to(wconv_ref[...].astype(bf16), (B, 6 * H, C3))
    z = lax.dot_general(cat3, wconv_b, (((2,), (1,)), ((0,), (0,))),
                        preferred_element_type=f32) + bconv_ref[...]
    z = jnp.maximum(z, 0.0)                                 # (B, L, C3)
    zmax = jnp.max(z, axis=1)                               # global max pool -> (B, C3)
    out_ref[...] = (jnp.dot(zmax.astype(bf16), wfc_ref[...].astype(bf16),
                            preferred_element_type=f32) + bfc_ref[...])


# ------------------------------- wrapper --------------------------------------
def tnet_lf_forward(params, raw_text, target, target_span, label=None):
    """Mirrors TNET_LF.forward: returns (loss, logits)."""
    f32 = jnp.float32
    feature_len = jnp.sum(raw_text != 0, axis=-1).astype(jnp.int32)   # (B,)
    aspect_len = jnp.sum(target != 0, axis=-1).astype(jnp.int32)      # (B,)
    feat = params["emb"][raw_text]                                    # (B, L, E)
    asp = params["emb"][target]                                       # (B, LA, E)
    asp_pad = jnp.pad(asp, ((0, 0), (0, L - LA), (0, 0)))             # (B, L, E)

    # fused per-step LSTM input: [feat_t | asp_t | feat_{L-1-t} | asp_{L-1-t}]
    x_big = jnp.concatenate(
        [feat, asp_pad, feat[:, ::-1, :], asp_pad[:, ::-1, :]], axis=2)   # (B, L, 4E)

    # valid-position masks (emulate pack_padded/pad_packed), fused per-step:
    # chain order [lstm1-fwd, lstm2-fwd, lstm1-bwd, lstm2-bwd]
    pos = jnp.arange(L)[None, :]
    fmask = (pos < feature_len[:, None]).astype(f32)                  # (B, L)
    amask = (pos < aspect_len[:, None]).astype(f32)                   # (B, L)

    def rep(m):
        return jnp.broadcast_to(m[:, :, None], (B, L, H))

    mstep = jnp.concatenate(
        [rep(fmask), rep(amask), rep(fmask[:, ::-1]), rep(amask[:, ::-1])],
        axis=2).astype(f32)                                           # (B, L, 4H)

    # Absolute_Position_Embedding.weight_matrix, vectorized
    j = jnp.arange(L)[None, :]
    s0 = target_span[:, 0:1]
    s1 = target_span[:, 1:2]
    left = 1.0 - (s1 - j).astype(f32) / 40.0
    right = 1.0 - (j - s0).astype(f32) / 40.0
    posw = jnp.where(j < s1, left, right)[:, :, None].astype(f32)     # (B, L, 1)

    vmem = pl.BlockSpec(memory_space=pltpu.MemorySpace.VMEM)
    logits = pl.pallas_call(
        _tnet_kernel,
        out_shape=jax.ShapeDtypeStruct((B, NL), jnp.float32),
        in_specs=[vmem] * 12,
        out_specs=vmem,
    )(x_big, mstep, posw,
      params["wih"], params["whh"], params["blstm"],
      params["wfc1"], params["bfc1"],
      params["wconv"], params["bconv"],
      params["wfc"], params["bfc"])

    loss = None
    if label is not None:
        # nn.CrossEntropyLoss (mean reduction) — plain-JAX glue.
        logp = jax.nn.log_softmax(logits, axis=-1)
        loss = -jnp.mean(jnp.take_along_axis(logp, label[:, None], axis=-1))
    return loss, logits


# --------------------------- parameter (re)layout ------------------------------
def _fuse_lstm_params(wih_pt, whh_pt, bih_pt, bhh_pt):
    """Build fused block-structured LSTM weights.

    PyTorch layout in: wih_pt (4, 4H, E), whh_pt (4, 4H, H), biases (4, 4H),
    direction order [lstm1-fwd, lstm1-bwd, lstm2-fwd, lstm2-bwd], gate rows i|f|g|o.

    Fused layout out:
      wih_fused (4E, 16H): row blocks per chain input slice of x_big,
      whh_fused (4H, 16H): block-diagonal over chains,
      b_fused   (1, 16H),
    with fused columns gate-major [i | f | o | g], chains [1f, 2f, 1b, 2b] inside.
    """
    dirs = [0, 2, 1, 3]                                   # chain -> pytorch direction
    gate_rows = [slice(0, H), slice(H, 2 * H), slice(3 * H, 4 * H), slice(2 * H, 3 * H)]
    wih_f = jnp.zeros((4 * E, GF), jnp.float32)
    whh_f = jnp.zeros((4 * H, GF), jnp.float32)
    b_f = jnp.zeros((1, GF), jnp.float32)
    for c, d in enumerate(dirs):
        for gidx, rows in enumerate(gate_rows):
            col = gidx * 4 * H + c * H
            wih_f = wih_f.at[c * E:(c + 1) * E, col:col + H].set(wih_pt[d][rows, :].T)
            whh_f = whh_f.at[c * H:(c + 1) * H, col:col + H].set(whh_pt[d][rows, :].T)
            b_f = b_f.at[0, col:col + H].set(bih_pt[d][rows] + bhh_pt[d][rows])
    return wih_f, whh_f, b_f


def init_params(key):
    ks = jax.random.split(key, 11)

    def u(k, shape, bound):
        return jax.random.uniform(k, shape, jnp.float32, -bound, bound)

    emb = 0.1 * jax.random.normal(ks[0], (VOCAB, E), jnp.float32)

    # PyTorch-layout LSTM params; direction order:
    #   0: lstm1 fwd, 1: lstm1 bwd, 2: lstm2 fwd, 3: lstm2 bwd
    kb = 1.0 / float(H) ** 0.5
    wih_pt = u(ks[1], (4, 4 * H, E), kb)
    whh_pt = u(ks[2], (4, 4 * H, H), kb)
    bih_pt = u(ks[3], (4, 4 * H), kb)
    bhh_pt = u(ks[4], (4, 4 * H), kb)

    kfc1 = 1.0 / float(4 * H) ** 0.5
    wfc1_pt = u(ks[5], (2 * H, 4 * H), kfc1)
    bfc1_pt = u(ks[6], (2 * H,), kfc1)

    kcv = 1.0 / float(2 * H * 3) ** 0.5
    wconv_pt = u(ks[7], (C3, 2 * H, 3), kcv)
    bconv_pt = u(ks[8], (C3,), kcv)

    kfc = 1.0 / float(C3) ** 0.5
    wfc_pt = u(ks[9], (NL, C3), kfc)
    bfc_pt = u(ks[10], (NL,), kfc)

    wih_f, whh_f, b_f = _fuse_lstm_params(wih_pt, whh_pt, bih_pt, bhh_pt)

    params = dict(
        emb=emb,
        wih=wih_f, whh=whh_f, blstm=b_f,
        wfc1=wfc1_pt.T, bfc1=bfc1_pt.reshape(1, 2 * H),
        # conv folded: rows [tap0(2H) ; tap1(2H) ; tap2(2H)] -> (6H, C3)
        wconv=jnp.concatenate([wconv_pt[:, :, k].T for k in range(3)], axis=0),
        bconv=bconv_pt.reshape(1, C3),
        wfc=wfc_pt.T, bfc=bfc_pt.reshape(1, NL),
    )
    ref = dict(emb=emb, wih_pt=wih_pt, whh_pt=whh_pt, bih_pt=bih_pt, bhh_pt=bhh_pt,
               wfc1_pt=wfc1_pt, bfc1_pt=bfc1_pt, wconv_pt=wconv_pt, bconv_pt=bconv_pt,
               wfc_pt=wfc_pt, bfc_pt=bfc_pt)
    return params, ref


# ------------------------ pure-JAX reference (check) ---------------------------
def _ref_lstm_bi(x, length, d_fwd, d_bwd, r):
    def run(xs, wih, whh, bih, bhh):
        def step(carry, xt):
            h, c = carry
            gates = wih @ xt + whh @ h + bih + bhh
            i, f, g, o = jnp.split(gates, 4)
            i = jax.nn.sigmoid(i); f = jax.nn.sigmoid(f)
            g = jnp.tanh(g); o = jax.nn.sigmoid(o)
            c = f * c + i * g
            h = o * jnp.tanh(c)
            return (h, c), h
        _, hs = lax.scan(step, (jnp.zeros(H), jnp.zeros(H)), xs)
        return hs

    T = x.shape[0]
    xv = x[:length]
    hf = run(xv, r["wih_pt"][d_fwd], r["whh_pt"][d_fwd], r["bih_pt"][d_fwd], r["bhh_pt"][d_fwd])
    hb = run(xv[::-1], r["wih_pt"][d_bwd], r["whh_pt"][d_bwd], r["bih_pt"][d_bwd], r["bhh_pt"][d_bwd])[::-1]
    out = jnp.concatenate([hf, hb], axis=-1)
    return jnp.concatenate([out, jnp.zeros((T - length, 2 * H))], axis=0)


def ref_forward(r, raw_text, target, target_span):
    feature_len = jnp.sum(raw_text != 0, axis=-1)
    aspect_len = jnp.sum(target != 0, axis=-1)
    feat = r["emb"][raw_text]
    asp = r["emb"][target]
    out = []
    for b in range(B):
        v = _ref_lstm_bi(feat[b], int(feature_len[b]), 0, 1, r)    # (L, 2H)
        e = _ref_lstm_bi(asp[b], int(aspect_len[b]), 2, 3, r)      # (LA, 2H)
        s0, s1 = int(target_span[b, 0]), int(target_span[b, 1])
        j = jnp.arange(L)
        w = jnp.where(j < s1, 1.0 - (s1 - j) / 40.0, 1.0 - (j - s0) / 40.0)
        for _ in range(2):
            a = jax.nn.softmax(e @ v.T, axis=0)                    # (LA, L)
            mid = a.T @ e                                          # (L, 2H)
            cat = jnp.concatenate([mid, v], axis=-1)
            mid = jax.nn.relu(cat @ r["wfc1_pt"].T + r["bfc1_pt"])
            v = mid + v
            v = w[:, None] * v
        vpad = jnp.pad(v, ((1, 1), (0, 0)))
        z = sum(vpad[k:k + L, :] @ r["wconv_pt"][:, :, k].T for k in range(3)) + r["bconv_pt"]
        z = jax.nn.relu(z)
        out.append(jnp.max(z, axis=0) @ r["wfc_pt"].T + r["bfc_pt"])
    return jnp.stack(out)


# --------------------------------- main ----------------------------------------
if __name__ == "__main__":
    key = jax.random.PRNGKey(0)
    params, ref_params = init_params(key)

    raw_text = jnp.array([[3, 7, 12, 5, 9, 2, 0, 0],
                          [4, 8, 1, 6, 11, 13, 15, 0]], dtype=jnp.int32)
    target = jnp.array([[5, 9, 0, 0],
                        [6, 11, 3, 0]], dtype=jnp.int32)
    target_span = jnp.array([[2, 4],
                             [3, 6]], dtype=jnp.int32)
    label = jnp.array([1, 2], dtype=jnp.int32)

    loss, logits = jax.jit(tnet_lf_forward)(params, raw_text, target, target_span, label)
    jax.block_until_ready((loss, logits))

    with jax.default_matmul_precision("highest"):
        ref_logits = ref_forward(ref_params, raw_text, target, target_span)

    assert logits.shape == (B, NL)
    # bf16 matmul operands inside the kernel -> modest precision tradeoff.
    assert jnp.allclose(logits, ref_logits, atol=3e-2, rtol=3e-2), \
        float(jnp.max(jnp.abs(logits - ref_logits)))
    print("KERNEL_OK")
</pallas_src>

<mosaic_0001>
module attributes {stable_mosaic.version = 11 : i64} {
  func.func @_tnet_kernel(%arg0: memref<2x8x128xf32, #tpu.memory_space<vmem>>, %arg1: memref<2x8x64xf32, #tpu.memory_space<vmem>>, %arg2: memref<2x8x1xf32, #tpu.memory_space<vmem>>, %arg3: memref<128x256xf32, #tpu.memory_space<vmem>>, %arg4: memref<64x256xf32, #tpu.memory_space<vmem>>, %arg5: memref<1x256xf32, #tpu.memory_space<vmem>>, %arg6: memref<64x32xf32, #tpu.memory_space<vmem>>, %arg7: memref<1x32xf32, #tpu.memory_space<vmem>>, %arg8: memref<96x50xf32, #tpu.memory_space<vmem>>, %arg9: memref<1x50xf32, #tpu.memory_space<vmem>>, %arg10: memref<50x3xf32, #tpu.memory_space<vmem>>, %arg11: memref<1x3xf32, #tpu.memory_space<vmem>>, %arg12: memref<2x3xf32, #tpu.memory_space<vmem>>) attributes {dimension_semantics = [], scalar_prefetch = 0 : i64, scratch_operands = 0 : i64, tpu.core_type = #tpu.core_type<tc>} {
    %c0 = arith.constant 0 : index
    %c0_0 = arith.constant 0 : index
    %c0_1 = arith.constant 0 : index
    %0 = vector.load %arg0[%c0, %c0_0, %c0_1] : memref<2x8x128xf32, #tpu.memory_space<vmem>>, vector<2x8x128xf32>
    %1 = arith.truncf %0 : vector<2x8x128xf32> to vector<2x8x128xbf16>
    %c0_2 = arith.constant 0 : index
    %c0_3 = arith.constant 0 : index
    %2 = vector.load %arg3[%c0_2, %c0_3] : memref<128x256xf32, #tpu.memory_space<vmem>>, vector<128x256xf32>
    %3 = arith.truncf %2 : vector<128x256xf32> to vector<128x256xbf16>
    %4 = vector.shape_cast %3 : vector<128x256xbf16> to vector<1x128x256xbf16>
    %5 = vector.broadcast %4 : vector<1x128x256xbf16> to vector<2x128x256xbf16>
    %cst = arith.constant dense<0.000000e+00> : vector<2x8x256xf32>
    %6 = tpu.matmul %1, %5, %cst {dimension_numbers = #tpu.dot_dimension_numbers<[2], [1], [1], [2], [0, 0, 0, 1, 1, 2], [0], [0]>} : vector<2x8x128xbf16>, vector<2x128x256xbf16>, vector<2x8x256xf32> -> vector<2x8x256xf32>
    %c0_4 = arith.constant 0 : index
    %c0_5 = arith.constant 0 : index
    %7 = vector.load %arg5[%c0_4, %c0_5] : memref<1x256xf32, #tpu.memory_space<vmem>>, vector<1x256xf32>
    %8 = vector.shape_cast %7 : vector<1x256xf32> to vector<1x1x256xf32>
    %9 = vector.broadcast %8 : vector<1x1x256xf32> to vector<2x8x256xf32>
    %10 = arith.addf %6, %9 : vector<2x8x256xf32>
    %c0_6 = arith.constant 0 : index
    %c0_7 = arith.constant 0 : index
    %c0_8 = arith.constant 0 : index
    %11 = vector.load %arg1[%c0_6, %c0_7, %c0_8] : memref<2x8x64xf32, #tpu.memory_space<vmem>>, vector<2x8x64xf32>
    %c0_9 = arith.constant 0 : index
    %c0_10 = arith.constant 0 : index
    %12 = vector.load %arg4[%c0_9, %c0_10] : memref<64x256xf32, #tpu.memory_space<vmem>>, vector<64x256xf32>
    %13 = arith.truncf %12 : vector<64x256xf32> to vector<64x256xbf16>
    %cst_11 = arith.constant 0.000000e+00 : f32
    %14 = vector.broadcast %cst_11 : f32 to vector<2x64xf32>
    %cst_12 = arith.constant 0.000000e+00 : f32
    %15 = vector.broadcast %cst_12 : f32 to vector<2x64xf32>
    %16 = vector.extract_strided_slice %10 {offsets = [0, 0, 0], sizes = [2, 1, 256], strides = [1, 1, 1]} : vector<2x8x256xf32> to vector<2x1x256xf32>
    %17 = vector.shape_cast %16 : vector<2x1x256xf32> to vector<2x256xf32>
    %18 = arith.truncf %14 : vector<2x64xf32> to vector<2x64xbf16>
    %cst_13 = arith.constant dense<0.000000e+00> : vector<2x256xf32>
    %19 = tpu.matmul %18, %13, %cst_13 {dimension_numbers = #tpu.dot_dimension_numbers<[1], [0], [0], [1], [0, 0, 1, 1], [], []>} : vector<2x64xbf16>, vector<64x256xbf16>, vector<2x256xf32> -> vector<2x256xf32>
    %20 = arith.addf %17, %19 : vector<2x256xf32>
    %21 = vector.extract_strided_slice %20 {offsets = [0, 0], sizes = [2, 192], strides = [1, 1]} : vector<2x256xf32> to vector<2x192xf32>
    %22 = arith.negf %21 : vector<2x192xf32>
    %23 = math.exp %22 : vector<2x192xf32>
    %cst_14 = arith.constant 1.000000e+00 : f32
    %24 = vector.broadcast %cst_14 : f32 to vector<2x192xf32>
    %25 = arith.addf %24, %23 : vector<2x192xf32>
    %26 = arith.divf %24, %25 : vector<2x192xf32>
    %27 = vector.extract_strided_slice %20 {offsets = [0, 192], sizes = [2, 64], strides = [1, 1]} : vector<2x256xf32> to vector<2x64xf32>
    %28 = math.tanh %27 : vector<2x64xf32>
    %29 = vector.extract_strided_slice %26 {offsets = [0, 0], sizes = [2, 64], strides = [1, 1]} : vector<2x192xf32> to vector<2x64xf32>
    %30 = vector.extract_strided_slice %26 {offsets = [0, 64], sizes = [2, 64], strides = [1, 1]} : vector<2x192xf32> to vector<2x64xf32>
    %31 = vector.extract_strided_slice %26 {offsets = [0, 128], sizes = [2, 64], strides = [1, 1]} : vector<2x192xf32> to vector<2x64xf32>
    %32 = vector.extract_strided_slice %11 {offsets = [0, 0, 0], sizes = [2, 1, 64], strides = [1, 1, 1]} : vector<2x8x64xf32> to vector<2x1x64xf32>
    %33 = vector.shape_cast %32 : vector<2x1x64xf32> to vector<2x64xf32>
    %34 = arith.mulf %30, %15 : vector<2x64xf32>
    %35 = arith.mulf %29, %28 : vector<2x64xf32>
    %36 = arith.addf %34, %35 : vector<2x64xf32>
    %37 = arith.mulf %33, %36 : vector<2x64xf32>
    %38 = math.tanh %37 : vector<2x64xf32>
    %39 = arith.mulf %31, %38 : vector<2x64xf32>
    %40 = arith.mulf %33, %39 : vector<2x64xf32>
    %41 = vector.extract_strided_slice %40 {offsets = [0, 0], sizes = [2, 16], strides = [1, 1]} : vector<2x64xf32> to vector<2x16xf32>
    %42 = vector.extract_strided_slice %40 {offsets = [0, 32], sizes = [2, 16], strides = [1, 1]} : vector<2x64xf32> to vector<2x16xf32>
    %43 = vector.extract_strided_slice %40 {offsets = [0, 16], sizes = [2, 16], strides = [1, 1]} : vector<2x64xf32> to vector<2x16xf32>
    %44 = vector.extract_strided_slice %10 {offsets = [0, 1, 0], sizes = [2, 1, 256], strides = [1, 1, 1]} : vector<2x8x256xf32> to vector<2x1x256xf32>
    %45 = vector.shape_cast %44 : vector<2x1x256xf32> to vector<2x256xf32>
    %46 = arith.truncf %40 : vector<2x64xf32> to vector<2x64xbf16>
    %cst_15 = arith.constant dense<0.000000e+00> : vector<2x256xf32>
    %47 = tpu.matmul %46, %13, %cst_15 {dimension_numbers = #tpu.dot_dimension_numbers<[1], [0], [0], [1], [0, 0, 1, 1], [], []>} : vector<2x64xbf16>, vector<64x256xbf16>, vector<2x256xf32> -> vector<2x256xf32>
    %48 = arith.addf %45, %47 : vector<2x256xf32>
    %49 = vector.extract_strided_slice %48 {offsets = [0, 0], sizes = [2, 192], strides = [1, 1]} : vector<2x256xf32> to vector<2x192xf32>
    %50 = arith.negf %49 : vector<2x192xf32>
    %51 = math.exp %50 : vector<2x192xf32>
    %cst_16 = arith.constant 1.000000e+00 : f32
    %52 = vector.broadcast %cst_16 : f32 to vector<2x192xf32>
    %53 = arith.addf %52, %51 : vector<2x192xf32>
    %54 = arith.divf %52, %53 : vector<2x192xf32>
    %55 = vector.extract_strided_slice %48 {offsets = [0, 192], sizes = [2, 64], strides = [1, 1]} : vector<2x256xf32> to vector<2x64xf32>
    %56 = math.tanh %55 : vector<2x64xf32>
    %57 = vector.extract_strided_slice %54 {offsets = [0, 0], sizes = [2, 64], strides = [1, 1]} : vector<2x192xf32> to vector<2x64xf32>
    %58 = vector.extract_strided_slice %54 {offsets = [0, 64], sizes = [2, 64], strides = [1, 1]} : vector<2x192xf32> to vector<2x64xf32>
    %59 = vector.extract_strided_slice %54 {offsets = [0, 128], sizes = [2, 64], strides = [1, 1]} : vector<2x192xf32> to vector<2x64xf32>
    %60 = vector.extract_strided_slice %11 {offsets = [0, 1, 0], sizes = [2, 1, 64], strides = [1, 1, 1]} : vector<2x8x64xf32> to vector<2x1x64xf32>
    %61 = vector.shape_cast %60 : vector<2x1x64xf32> to vector<2x64xf32>
    %62 = arith.mulf %58, %37 : vector<2x64xf32>
    %63 = arith.mulf %57, %56 : vector<2x64xf32>
    %64 = arith.addf %62, %63 : vector<2x64xf32>
    %65 = arith.mulf %61, %64 : vector<2x64xf32>
    %66 = math.tanh %65 : vector<2x64xf32>
    %67 = arith.mulf %59, %66 : vector<2x64xf32>
    %68 = arith.mulf %61, %67 : vector<2x64xf32>
    %69 = vector.extract_strided_slice %68 {offsets = [0, 0], sizes = [2, 16], strides = [1, 1]} : vector<2x64xf32> to vector<2x16xf32>
    %70 = vector.extract_strided_slice %68 {offsets = [0, 32], sizes = [2, 16], strides = [1, 1]} : vector<2x64xf32> to vector<2x16xf32>
    %71 = vector.extract_strided_slice %68 {offsets = [0, 16], sizes = [2, 16], strides = [1, 1]} : vector<2x64xf32> to vector<2x16xf32>
    %72 = vector.extract_strided_slice %10 {offsets = [0, 2, 0], sizes = [2, 1, 256], strides = [1, 1, 1]} : vector<2x8x256xf32> to vector<2x1x256xf32>
    %73 = vector.shape_cast %72 : vector<2x1x256xf32> to vector<2x256xf32>
    %74 = arith.truncf %68 : vector<2x64xf32> to vector<2x64xbf16>
    %cst_17 = arith.constant dense<0.000000e+00> : vector<2x256xf32>
    %75 = tpu.matmul %74, %13, %cst_17 {dimension_numbers = #tpu.dot_dimension_numbers<[1], [0], [0], [1], [0, 0, 1, 1], [], []>} : vector<2x64xbf16>, vector<64x256xbf16>, vector<2x256xf32> -> vector<2x256xf32>
    %76 = arith.addf %73, %75 : vector<2x256xf32>
    %77 = vector.extract_strided_slice %76 {offsets = [0, 0], sizes = [2, 192], strides = [1, 1]} : vector<2x256xf32> to vector<2x192xf32>
    %78 = arith.negf %77 : vector<2x192xf32>
    %79 = math.exp %78 : vector<2x192xf32>
    %cst_18 = arith.constant 1.000000e+00 : f32
    %80 = vector.broadcast %cst_18 : f32 to vector<2x192xf32>
    %81 = arith.addf %80, %79 : vector<2x192xf32>
    %82 = arith.divf %80, %81 : vector<2x192xf32>
    %83 = vector.extract_strided_slice %76 {offsets = [0, 192], sizes = [2, 64], strides = [1, 1]} : vector<2x256xf32> to vector<2x64xf32>
    %84 = math.tanh %83 : vector<2x64xf32>
    %85 = vector.extract_strided_slice %82 {offsets = [0, 0], sizes = [2, 64], strides = [1, 1]} : vector<2x192xf32> to vector<2x64xf32>
    %86 = vector.extract_strided_slice %82 {offsets = [0, 64], sizes = [2, 64], strides = [1, 1]} : vector<2x192xf32> to vector<2x64xf32>
    %87 = vector.extract_strided_slice %82 {offsets = [0, 128], sizes = [2, 64], strides = [1, 1]} : vector<2x192xf32> to vector<2x64xf32>
    %88 = vector.extract_strided_slice %11 {offsets = [0, 2, 0], sizes = [2, 1, 64], strides = [1, 1, 1]} : vector<2x8x64xf32> to vector<2x1x64xf32>
    %89 = vector.shape_cast %88 : vector<2x1x64xf32> to vector<2x64xf32>
    %90 = arith.mulf %86, %65 : vector<2x64xf32>
    %91 = arith.mulf %85, %84 : vector<2x64xf32>
    %92 = arith.addf %90, %91 : vector<2x64xf32>
    %93 = arith.mulf %89, %92 : vector<2x64xf32>
    %94 = math.tanh %93 : vector<2x64xf32>
    %95 = arith.mulf %87, %94 : vector<2x64xf32>
    %96 = arith.mulf %89, %95 : vector<2x64xf32>
    %97 = vector.extract_strided_slice %96 {offsets = [0, 0], sizes = [2, 16], strides = [1, 1]} : vector<2x64xf32> to vector<2x16xf32>
    %98 = vector.extract_strided_slice %96 {offsets = [0, 32], sizes = [2, 16], strides = [1, 1]} : vector<2x64xf32> to vector<2x16xf32>
    %99 = vector.extract_strided_slice %96 {offsets = [0, 16], sizes = [2, 16], strides = [1, 1]} : vector<2x64xf32> to vector<2x16xf32>
    %100 = vector.extract_strided_slice %10 {offsets = [0, 3, 0], sizes = [2, 1, 256], strides = [1, 1, 1]} : vector<2x8x256xf32> to vector<2x1x256xf32>
    %101 = vector.shape_cast %100 : vector<2x1x256xf32> to vector<2x256xf32>
    %102 = arith.truncf %96 : vector<2x64xf32> to vector<2x64xbf16>
    %cst_19 = arith.constant dense<0.000000e+00> : vector<2x256xf32>
    %103 = tpu.matmul %102, %13, %cst_19 {dimension_numbers = #tpu.dot_dimension_numbers<[1], [0], [0], [1], [0, 0, 1, 1], [], []>} : vector<2x64xbf16>, vector<64x256xbf16>, vector<2x256xf32> -> vector<2x256xf32>
    %104 = arith.addf %101, %103 : vector<2x256xf32>
    %105 = vector.extract_strided_slice %104 {offsets = [0, 0], sizes = [2, 192], strides = [1, 1]} : vector<2x256xf32> to vector<2x192xf32>
    %106 = arith.negf %105 : vector<2x192xf32>
    %107 = math.exp %106 : vector<2x192xf32>
    %cst_20 = arith.constant 1.000000e+00 : f32
    %108 = vector.broadcast %cst_20 : f32 to vector<2x192xf32>
    %109 = arith.addf %108, %107 : vector<2x192xf32>
    %110 = arith.divf %108, %109 : vector<2x192xf32>
    %111 = vector.extract_strided_slice %104 {offsets = [0, 192], sizes = [2, 64], strides = [1, 1]} : vector<2x256xf32> to vector<2x64xf32>
    %112 = math.tanh %111 : vector<2x64xf32>
    %113 = vector.extract_strided_slice %110 {offsets = [0, 0], sizes = [2, 64], strides = [1, 1]} : vector<2x192xf32> to vector<2x64xf32>
    %114 = vector.extract_strided_slice %110 {offsets = [0, 64], sizes = [2, 64], strides = [1, 1]} : vector<2x192xf32> to vector<2x64xf32>
    %115 = vector.extract_strided_slice %110 {offsets = [0, 128], sizes = [2, 64], strides = [1, 1]} : vector<2x192xf32> to vector<2x64xf32>
    %116 = vector.extract_strided_slice %11 {offsets = [0, 3, 0], sizes = [2, 1, 64], strides = [1, 1, 1]} : vector<2x8x64xf32> to vector<2x1x64xf32>
    %117 = vector.shape_cast %116 : vector<2x1x64xf32> to vector<2x64xf32>
    %118 = arith.mulf %114, %93 : vector<2x64xf32>
    %119 = arith.mulf %113, %112 : vector<2x64xf32>
    %120 = arith.addf %118, %119 : vector<2x64xf32>
    %121 = arith.mulf %117, %120 : vector<2x64xf32>
    %122 = math.tanh %121 : vector<2x64xf32>
    %123 = arith.mulf %115, %122 : vector<2x64xf32>
    %124 = arith.mulf %117, %123 : vector<2x64xf32>
    %125 = vector.extract_strided_slice %124 {offsets = [0, 0], sizes = [2, 16], strides = [1, 1]} : vector<2x64xf32> to vector<2x16xf32>
    %126 = vector.extract_strided_slice %124 {offsets = [0, 32], sizes = [2, 16], strides = [1, 1]} : vector<2x64xf32> to vector<2x16xf32>
    %127 = vector.extract_strided_slice %124 {offsets = [0, 16], sizes = [2, 16], strides = [1, 1]} : vector<2x64xf32> to vector<2x16xf32>
    %128 = vector.extract_strided_slice %10 {offsets = [0, 4, 0], sizes = [2, 1, 256], strides = [1, 1, 1]} : vector<2x8x256xf32> to vector<2x1x256xf32>
    %129 = vector.shape_cast %128 : vector<2x1x256xf32> to vector<2x256xf32>
    %130 = arith.truncf %124 : vector<2x64xf32> to vector<2x64xbf16>
    %cst_21 = arith.constant dense<0.000000e+00> : vector<2x256xf32>
    %131 = tpu.matmul %130, %13, %cst_21 {dimension_numbers = #tpu.dot_dimension_numbers<[1], [0], [0], [1], [0, 0, 1, 1], [], []>} : vector<2x64xbf16>, vector<64x256xbf16>, vector<2x256xf32> -> vector<2x256xf32>
    %132 = arith.addf %129, %131 : vector<2x256xf32>
    %133 = vector.extract_strided_slice %132 {offsets = [0, 0], sizes = [2, 192], strides = [1, 1]} : vector<2x256xf32> to vector<2x192xf32>
    %134 = arith.negf %133 : vector<2x192xf32>
    %135 = math.exp %134 : vector<2x192xf32>
    %cst_22 = arith.constant 1.000000e+00 : f32
    %136 = vector.broadcast %cst_22 : f32 to vector<2x192xf32>
    %137 = arith.addf %136, %135 : vector<2x192xf32>
    %138 = arith.divf %136, %137 : vector<2x192xf32>
    %139 = vector.extract_strided_slice %132 {offsets = [0, 192], sizes = [2, 64], strides = [1, 1]} : vector<2x256xf32> to vector<2x64xf32>
    %140 = math.tanh %139 : vector<2x64xf32>
    %141 = vector.extract_strided_slice %138 {offsets = [0, 0], sizes = [2, 64], strides = [1, 1]} : vector<2x192xf32> to vector<2x64xf32>
    %142 = vector.extract_strided_slice %138 {offsets = [0, 64], sizes = [2, 64], strides = [1, 1]} : vector<2x192xf32> to vector<2x64xf32>
    %143 = vector.extract_strided_slice %138 {offsets = [0, 128], sizes = [2, 64], strides = [1, 1]} : vector<2x192xf32> to vector<2x64xf32>
    %144 = vector.extract_strided_slice %11 {offsets = [0, 4, 0], sizes = [2, 1, 64], strides = [1, 1, 1]} : vector<2x8x64xf32> to vector<2x1x64xf32>
    %145 = vector.shape_cast %144 : vector<2x1x64xf32> to vector<2x64xf32>
    %146 = arith.mulf %142, %121 : vector<2x64xf32>
    %147 = arith.mulf %141, %140 : vector<2x64xf32>
    %148 = arith.addf %146, %147 : vector<2x64xf32>
    %149 = arith.mulf %145, %148 : vector<2x64xf32>
    %150 = math.tanh %149 : vector<2x64xf32>
    %151 = arith.mulf %143, %150 : vector<2x64xf32>
    %152 = arith.mulf %145, %151 : vector<2x64xf32>
    %153 = vector.extract_strided_slice %152 {offsets = [0, 0], sizes = [2, 16], strides = [1, 1]} : vector<2x64xf32> to vector<2x16xf32>
    %154 = vector.extract_strided_slice %152 {offsets = [0, 32], sizes = [2, 16], strides = [1, 1]} : vector<2x64xf32> to vector<2x16xf32>
    %155 = vector.extract_strided_slice %152 {offsets = [0, 48], sizes = [2, 16], strides = [1, 1]} : vector<2x64xf32> to vector<2x16xf32>
    %156 = vector.extract_strided_slice %10 {offsets = [0, 5, 0], sizes = [2, 1, 256], strides = [1, 1, 1]} : vector<2x8x256xf32> to vector<2x1x256xf32>
    %157 = vector.shape_cast %156 : vector<2x1x256xf32> to vector<2x256xf32>
    %158 = arith.truncf %152 : vector<2x64xf32> to vector<2x64xbf16>
    %cst_23 = arith.constant dense<0.000000e+00> : vector<2x256xf32>
    %159 = tpu.matmul %158, %13, %cst_23 {dimension_numbers = #tpu.dot_dimension_numbers<[1], [0], [0], [1], [0, 0, 1, 1], [], []>} : vector<2x64xbf16>, vector<64x256xbf16>, vector<2x256xf32> -> vector<2x256xf32>
    %160 = arith.addf %157, %159 : vector<2x256xf32>
    %161 = vector.extract_strided_slice %160 {offsets = [0, 0], sizes = [2, 192], strides = [1, 1]} : vector<2x256xf32> to vector<2x192xf32>
    %162 = arith.negf %161 : vector<2x192xf32>
    %163 = math.exp %162 : vector<2x192xf32>
    %cst_24 = arith.constant 1.000000e+00 : f32
    %164 = vector.broadcast %cst_24 : f32 to vector<2x192xf32>
    %165 = arith.addf %164, %163 : vector<2x192xf32>
    %166 = arith.divf %164, %165 : vector<2x192xf32>
    %167 = vector.extract_strided_slice %160 {offsets = [0, 192], sizes = [2, 64], strides = [1, 1]} : vector<2x256xf32> to vector<2x64xf32>
    %168 = math.tanh %167 : vector<2x64xf32>
    %169 = vector.extract_strided_slice %166 {offsets = [0, 0], sizes = [2, 64], strides = [1, 1]} : vector<2x192xf32> to vector<2x64xf32>
    %170 = vector.extract_strided_slice %166 {offsets = [0, 64], sizes = [2, 64], strides = [1, 1]} : vector<2x192xf32> to vector<2x64xf32>
    %171 = vector.extract_strided_slice %166 {offsets = [0, 128], sizes = [2, 64], strides = [1, 1]} : vector<2x192xf32> to vector<2x64xf32>
    %172 = vector.extract_strided_slice %11 {offsets = [0, 5, 0], sizes = [2, 1, 64], strides = [1, 1, 1]} : vector<2x8x64xf32> to vector<2x1x64xf32>
    %173 = vector.shape_cast %172 : vector<2x1x64xf32> to vector<2x64xf32>
    %174 = arith.mulf %170, %149 : vector<2x64xf32>
    %175 = arith.mulf %169, %168 : vector<2x64xf32>
    %176 = arith.addf %174, %175 : vector<2x64xf32>
    %177 = arith.mulf %173, %176 : vector<2x64xf32>
    %178 = math.tanh %177 : vector<2x64xf32>
    %179 = arith.mulf %171, %178 : vector<2x64xf32>
    %180 = arith.mulf %173, %179 : vector<2x64xf32>
    %181 = vector.extract_strided_slice %180 {offsets = [0, 0], sizes = [2, 16], strides = [1, 1]} : vector<2x64xf32> to vector<2x16xf32>
    %182 = vector.extract_strided_slice %180 {offsets = [0, 32], sizes = [2, 16], strides = [1, 1]} : vector<2x64xf32> to vector<2x16xf32>
    %183 = vector.extract_strided_slice %180 {offsets = [0, 48], sizes = [2, 16], strides = [1, 1]} : vector<2x64xf32> to vector<2x16xf32>
    %184 = vector.extract_strided_slice %10 {offsets = [0, 6, 0], sizes = [2, 1, 256], strides = [1, 1, 1]} : vector<2x8x256xf32> to vector<2x1x256xf32>
    %185 = vector.shape_cast %184 : vector<2x1x256xf32> to vector<2x256xf32>
    %186 = arith.truncf %180 : vector<2x64xf32> to vector<2x64xbf16>
    %cst_25 = arith.constant dense<0.000000e+00> : vector<2x256xf32>
    %187 = tpu.matmul %186, %13, %cst_25 {dimension_numbers = #tpu.dot_dimension_numbers<[1], [0], [0], [1], [0, 0, 1, 1], [], []>} : vector<2x64xbf16>, vector<64x256xbf16>, vector<2x256xf32> -> vector<2x256xf32>
    %188 = arith.addf %185, %187 : vector<2x256xf32>
    %189 = vector.extract_strided_slice %188 {offsets = [0, 0], sizes = [2, 192], strides = [1, 1]} : vector<2x256xf32> to vector<2x192xf32>
    %190 = arith.negf %189 : vector<2x192xf32>
    %191 = math.exp %190 : vector<2x192xf32>
    %cst_26 = arith.constant 1.000000e+00 : f32
    %192 = vector.broadcast %cst_26 : f32 to vector<2x192xf32>
    %193 = arith.addf %192, %191 : vector<2x192xf32>
    %194 = arith.divf %192, %193 : vector<2x192xf32>
    %195 = vector.extract_strided_slice %188 {offsets = [0, 192], sizes = [2, 64], strides = [1, 1]} : vector<2x256xf32> to vector<2x64xf32>
    %196 = math.tanh %195 : vector<2x64xf32>
    %197 = vector.extract_strided_slice %194 {offsets = [0, 0], sizes = [2, 64], strides = [1, 1]} : vector<2x192xf32> to vector<2x64xf32>
    %198 = vector.extract_strided_slice %194 {offsets = [0, 64], sizes = [2, 64], strides = [1, 1]} : vector<2x192xf32> to vector<2x64xf32>
    %199 = vector.extract_strided_slice %194 {offsets = [0, 128], sizes = [2, 64], strides = [1, 1]} : vector<2x192xf32> to vector<2x64xf32>
    %200 = vector.extract_strided_slice %11 {offsets = [0, 6, 0], sizes = [2, 1, 64], strides = [1, 1, 1]} : vector<2x8x64xf32> to vector<2x1x64xf32>
    %201 = vector.shape_cast %200 : vector<2x1x64xf32> to vector<2x64xf32>
    %202 = arith.mulf %198, %177 : vector<2x64xf32>
    %203 = arith.mulf %197, %196 : vector<2x64xf32>
    %204 = arith.addf %202, %203 : vector<2x64xf32>
    %205 = arith.mulf %201, %204 : vector<2x64xf32>
    %206 = math.tanh %205 : vector<2x64xf32>
    %207 = arith.mulf %199, %206 : vector<2x64xf32>
    %208 = arith.mulf %201, %207 : vector<2x64xf32>
    %209 = vector.extract_strided_slice %208 {offsets = [0, 0], sizes = [2, 16], strides = [1, 1]} : vector<2x64xf32> to vector<2x16xf32>
    %210 = vector.extract_strided_slice %208 {offsets = [0, 32], sizes = [2, 16], strides = [1, 1]} : vector<2x64xf32> to vector<2x16xf32>
    %211 = vector.extract_strided_slice %208 {offsets = [0, 48], sizes = [2, 16], strides = [1, 1]} : vector<2x64xf32> to vector<2x16xf32>
    %212 = vector.extract_strided_slice %10 {offsets = [0, 7, 0], sizes = [2, 1, 256], strides = [1, 1, 1]} : vector<2x8x256xf32> to vector<2x1x256xf32>
    %213 = vector.shape_cast %212 : vector<2x1x256xf32> to vector<2x256xf32>
    %214 = arith.truncf %208 : vector<2x64xf32> to vector<2x64xbf16>
    %cst_27 = arith.constant dense<0.000000e+00> : vector<2x256xf32>
    %215 = tpu.matmul %214, %13, %cst_27 {dimension_numbers = #tpu.dot_dimension_numbers<[1], [0], [0], [1], [0, 0, 1, 1], [], []>} : vector<2x64xbf16>, vector<64x256xbf16>, vector<2x256xf32> -> vector<2x256xf32>
    %216 = arith.addf %213, %215 : vector<2x256xf32>
    %217 = vector.extract_strided_slice %216 {offsets = [0, 0], sizes = [2, 192], strides = [1, 1]} : vector<2x256xf32> to vector<2x192xf32>
    %218 = arith.negf %217 : vector<2x192xf32>
    %219 = math.exp %218 : vector<2x192xf32>
    %cst_28 = arith.constant 1.000000e+00 : f32
    %220 = vector.broadcast %cst_28 : f32 to vector<2x192xf32>
    %221 = arith.addf %220, %219 : vector<2x192xf32>
    %222 = arith.divf %220, %221 : vector<2x192xf32>
    %223 = vector.extract_strided_slice %216 {offsets = [0, 192], sizes = [2, 64], strides = [1, 1]} : vector<2x256xf32> to vector<2x64xf32>
    %224 = math.tanh %223 : vector<2x64xf32>
    %225 = vector.extract_strided_slice %222 {offsets = [0, 0], sizes = [2, 64], strides = [1, 1]} : vector<2x192xf32> to vector<2x64xf32>
    %226 = vector.extract_strided_slice %222 {offsets = [0, 64], sizes = [2, 64], strides = [1, 1]} : vector<2x192xf32> to vector<2x64xf32>
    %227 = vector.extract_strided_slice %222 {offsets = [0, 128], sizes = [2, 64], strides = [1, 1]} : vector<2x192xf32> to vector<2x64xf32>
    %228 = vector.extract_strided_slice %11 {offsets = [0, 7, 0], sizes = [2, 1, 64], strides = [1, 1, 1]} : vector<2x8x64xf32> to vector<2x1x64xf32>
    %229 = vector.shape_cast %228 : vector<2x1x64xf32> to vector<2x64xf32>
    %230 = arith.mulf %226, %205 : vector<2x64xf32>
    %231 = arith.mulf %225, %224 : vector<2x64xf32>
    %232 = arith.addf %230, %231 : vector<2x64xf32>
    %233 = arith.mulf %229, %232 : vector<2x64xf32>
    %234 = math.tanh %233 : vector<2x64xf32>
    %235 = arith.mulf %227, %234 : vector<2x64xf32>
    %236 = arith.mulf %229, %235 : vector<2x64xf32>
    %237 = vector.extract_strided_slice %236 {offsets = [0, 0], sizes = [2, 16], strides = [1, 1]} : vector<2x64xf32> to vector<2x16xf32>
    %238 = vector.extract_strided_slice %236 {offsets = [0, 32], sizes = [2, 16], strides = [1, 1]} : vector<2x64xf32> to vector<2x16xf32>
    %239 = vector.extract_strided_slice %236 {offsets = [0, 48], sizes = [2, 16], strides = [1, 1]} : vector<2x64xf32> to vector<2x16xf32>
    %240 = vector.shape_cast %41 : vector<2x16xf32> to vector<2x1x16xf32>
    %241 = vector.shape_cast %69 : vector<2x16xf32> to vector<2x1x16xf32>
    %242 = vector.shape_cast %97 : vector<2x16xf32> to vector<2x1x16xf32>
    %243 = vector.shape_cast %125 : vector<2x16xf32> to vector<2x1x16xf32>
    %244 = vector.shape_cast %153 : vector<2x16xf32> to vector<2x1x16xf32>
    %245 = vector.shape_cast %181 : vector<2x16xf32> to vector<2x1x16xf32>
    %246 = vector.shape_cast %209 : vector<2x16xf32> to vector<2x1x16xf32>
    %247 = vector.shape_cast %237 : vector<2x16xf32> to vector<2x1x16xf32>
    %248 = tpu.concatenate %240, %241, %242, %243, %244, %245, %246, %247 in 1 : vector<2x1x16xf32>, vector<2x1x16xf32>, vector<2x1x16xf32>, vector<2x1x16xf32>, vector<2x1x16xf32>, vector<2x1x16xf32>, vector<2x1x16xf32>, vector<2x1x16xf32> -> vector<2x8x16xf32>
    %249 = vector.shape_cast %238 : vector<2x16xf32> to vector<2x1x16xf32>
    %250 = vector.shape_cast %210 : vector<2x16xf32> to vector<2x1x16xf32>
    %251 = vector.shape_cast %182 : vector<2x16xf32> to vector<2x1x16xf32>
    %252 = vector.shape_cast %154 : vector<2x16xf32> to vector<2x1x16xf32>
    %253 = vector.shape_cast %126 : vector<2x16xf32> to vector<2x1x16xf32>
    %254 = vector.shape_cast %98 : vector<2x16xf32> to vector<2x1x16xf32>
    %255 = vector.shape_cast %70 : vector<2x16xf32> to vector<2x1x16xf32>
    %256 = vector.shape_cast %42 : vector<2x16xf32> to vector<2x1x16xf32>
    %257 = tpu.concatenate %249, %250, %251, %252, %253, %254, %255, %256 in 1 : vector<2x1x16xf32>, vector<2x1x16xf32>, vector<2x1x16xf32>, vector<2x1x16xf32>, vector<2x1x16xf32>, vector<2x1x16xf32>, vector<2x1x16xf32>, vector<2x1x16xf32> -> vector<2x8x16xf32>
    %258 = tpu.concatenate %248, %257 in 2 : vector<2x8x16xf32>, vector<2x8x16xf32> -> vector<2x8x32xf32>
    %259 = vector.shape_cast %43 : vector<2x16xf32> to vector<2x1x16xf32>
    %260 = vector.shape_cast %71 : vector<2x16xf32> to vector<2x1x16xf32>
    %261 = vector.shape_cast %99 : vector<2x16xf32> to vector<2x1x16xf32>
    %262 = vector.shape_cast %127 : vector<2x16xf32> to vector<2x1x16xf32>
    %263 = tpu.concatenate %259, %260, %261, %262 in 1 : vector<2x1x16xf32>, vector<2x1x16xf32>, vector<2x1x16xf32>, vector<2x1x16xf32> -> vector<2x4x16xf32>
    %264 = vector.shape_cast %239 : vector<2x16xf32> to vector<2x1x16xf32>
    %265 = vector.shape_cast %211 : vector<2x16xf32> to vector<2x1x16xf32>
    %266 = vector.shape_cast %183 : vector<2x16xf32> to vector<2x1x16xf32>
    %267 = vector.shape_cast %155 : vector<2x16xf32> to vector<2x1x16xf32>
    %268 = tpu.concatenate %264, %265, %266, %267 in 1 : vector<2x1x16xf32>, vector<2x1x16xf32>, vector<2x1x16xf32>, vector<2x1x16xf32> -> vector<2x4x16xf32>
    %269 = tpu.concatenate %263, %268 in 2 : vector<2x4x16xf32>, vector<2x4x16xf32> -> vector<2x4x32xf32>
    %c0_29 = arith.constant 0 : index
    %c0_30 = arith.constant 0 : index
    %270 = vector.load %arg6[%c0_29, %c0_30] : memref<64x32xf32, #tpu.memory_space<vmem>>, vector<64x32xf32>
    %271 = arith.truncf %270 : vector<64x32xf32> to vector<64x32xbf16>
    %272 = vector.shape_cast %271 : vector<64x32xbf16> to vector<1x64x32xbf16>
    %273 = vector.broadcast %272 : vector<1x64x32xbf16> to vector<2x64x32xbf16>
    %c0_31 = arith.constant 0 : index
    %c0_32 = arith.constant 0 : index
    %274 = vector.load %arg7[%c0_31, %c0_32] : memref<1x32xf32, #tpu.memory_space<vmem>>, vector<1x32xf32>
    %c0_33 = arith.constant 0 : index
    %c0_34 = arith.constant 0 : index
    %c0_35 = arith.constant 0 : index
    %275 = vector.load %arg2[%c0_33, %c0_34, %c0_35] : memref<2x8x1xf32, #tpu.memory_space<vmem>>, vector<2x8x1xf32>
    %276 = arith.truncf %269 : vector<2x4x32xf32> to vector<2x4x32xbf16>
    %277 = arith.truncf %258 : vector<2x8x32xf32> to vector<2x8x32xbf16>
    %cst_36 = arith.constant dense<0.000000e+00> : vector<2x4x8xf32>
    %278 = tpu.matmul %276, %277, %cst_36 {dimension_numbers = #tpu.dot_dimension_numbers<[2], [2], [1], [1], [0, 0, 0, 1, 1, 1], [0], [0]>} : vector<2x4x32xbf16>, vector<2x8x32xbf16>, vector<2x4x8xf32> -> vector<2x4x8xf32>
    %cst_37 = arith.constant dense<0xFF800000> : vector<2x8xf32>
    %279 = vector.multi_reduction <maximumf>, %278, %cst_37 [1] : vector<2x4x8xf32> to vector<2x8xf32>
    %280 = vector.shape_cast %279 : vector<2x8xf32> to vector<2x1x8xf32>
    %281 = vector.broadcast %280 : vector<2x1x8xf32> to vector<2x4x8xf32>
    %282 = arith.subf %278, %281 : vector<2x4x8xf32>
    %283 = math.exp %282 : vector<2x4x8xf32>
    %cst_38 = arith.constant dense<0.000000e+00> : vector<2x8xf32>
    %284 = vector.multi_reduction <add>, %283, %cst_38 [1] : vector<2x4x8xf32> to vector<2x8xf32>
    %285 = vector.shape_cast %284 : vector<2x8xf32> to vector<2x1x8xf32>
    %286 = tpu.reciprocal %285 {approx = true} : vector<2x1x8xf32> -> vector<2x1x8xf32>
    %287 = vector.broadcast %286 : vector<2x1x8xf32> to vector<2x4x8xf32>
    %288 = arith.mulf %283, %287 : vector<2x4x8xf32>
    %289 = arith.truncf %288 : vector<2x4x8xf32> to vector<2x4x8xbf16>
    %cst_39 = arith.constant dense<0.000000e+00> : vector<2x8x32xf32>
    %290 = tpu.matmul %289, %276, %cst_39 {dimension_numbers = #tpu.dot_dimension_numbers<[1], [1], [2], [2], [0, 0, 0, 2, 1, 2], [0], [0]>} : vector<2x4x8xbf16>, vector<2x4x32xbf16>, vector<2x8x32xf32> -> vector<2x8x32xf32>
    %291 = tpu.concatenate %290, %258 in 2 : vector<2x8x32xf32>, vector<2x8x32xf32> -> vector<2x8x64xf32>
    %292 = arith.truncf %291 : vector<2x8x64xf32> to vector<2x8x64xbf16>
    %cst_40 = arith.constant dense<0.000000e+00> : vector<2x8x32xf32>
    %293 = tpu.matmul %292, %273, %cst_40 {dimension_numbers = #tpu.dot_dimension_numbers<[2], [1], [1], [2], [0, 0, 0, 1, 1, 2], [0], [0]>} : vector<2x8x64xbf16>, vector<2x64x32xbf16>, vector<2x8x32xf32> -> vector<2x8x32xf32>
    %294 = vector.shape_cast %274 : vector<1x32xf32> to vector<1x1x32xf32>
    %295 = vector.broadcast %294 : vector<1x1x32xf32> to vector<2x8x32xf32>
    %296 = arith.addf %293, %295 : vector<2x8x32xf32>
    %cst_41 = arith.constant 0.000000e+00 : f32
    %297 = vector.broadcast %cst_41 : f32 to vector<2x8x32xf32>
    %298 = arith.maximumf %296, %297 : vector<2x8x32xf32>
    %299 = arith.addf %298, %258 : vector<2x8x32xf32>
    %300 = vector.broadcast %275 : vector<2x8x1xf32> to vector<2x8x32xf32>
    %301 = arith.mulf %300, %299 : vector<2x8x32xf32>
    %302 = arith.truncf %301 : vector<2x8x32xf32> to vector<2x8x32xbf16>
    %cst_42 = arith.constant dense<0.000000e+00> : vector<2x4x8xf32>
    %303 = tpu.matmul %276, %302, %cst_42 {dimension_numbers = #tpu.dot_dimension_numbers<[2], [2], [1], [1], [0, 0, 0, 1, 1, 1], [0], [0]>} : vector<2x4x32xbf16>, vector<2x8x32xbf16>, vector<2x4x8xf32> -> vector<2x4x8xf32>
    %cst_43 = arith.constant dense<0xFF800000> : vector<2x8xf32>
    %304 = vector.multi_reduction <maximumf>, %303, %cst_43 [1] : vector<2x4x8xf32> to vector<2x8xf32>
    %305 = vector.shape_cast %304 : vector<2x8xf32> to vector<2x1x8xf32>
    %306 = vector.broadcast %305 : vector<2x1x8xf32> to vector<2x4x8xf32>
    %307 = arith.subf %303, %306 : vector<2x4x8xf32>
    %308 = math.exp %307 : vector<2x4x8xf32>
    %cst_44 = arith.constant dense<0.000000e+00> : vector<2x8xf32>
    %309 = vector.multi_reduction <add>, %308, %cst_44 [1] : vector<2x4x8xf32> to vector<2x8xf32>
    %310 = vector.shape_cast %309 : vector<2x8xf32> to vector<2x1x8xf32>
    %311 = tpu.reciprocal %310 {approx = true} : vector<2x1x8xf32> -> vector<2x1x8xf32>
    %312 = vector.broadcast %311 : vector<2x1x8xf32> to vector<2x4x8xf32>
    %313 = arith.mulf %308, %312 : vector<2x4x8xf32>
    %314 = arith.truncf %313 : vector<2x4x8xf32> to vector<2x4x8xbf16>
    %cst_45 = arith.constant dense<0.000000e+00> : vector<2x8x32xf32>
    %315 = tpu.matmul %314, %276, %cst_45 {dimension_numbers = #tpu.dot_dimension_numbers<[1], [1], [2], [2], [0, 0, 0, 2, 1, 2], [0], [0]>} : vector<2x4x8xbf16>, vector<2x4x32xbf16>, vector<2x8x32xf32> -> vector<2x8x32xf32>
    %316 = tpu.concatenate %315, %301 in 2 : vector<2x8x32xf32>, vector<2x8x32xf32> -> vector<2x8x64xf32>
    %317 = arith.truncf %316 : vector<2x8x64xf32> to vector<2x8x64xbf16>
    %cst_46 = arith.constant dense<0.000000e+00> : vector<2x8x32xf32>
    %318 = tpu.matmul %317, %273, %cst_46 {dimension_numbers = #tpu.dot_dimension_numbers<[2], [1], [1], [2], [0, 0, 0, 1, 1, 2], [0], [0]>} : vector<2x8x64xbf16>, vector<2x64x32xbf16>, vector<2x8x32xf32> -> vector<2x8x32xf32>
    %319 = vector.shape_cast %274 : vector<1x32xf32> to vector<1x1x32xf32>
    %320 = vector.broadcast %319 : vector<1x1x32xf32> to vector<2x8x32xf32>
    %321 = arith.addf %318, %320 : vector<2x8x32xf32>
    %cst_47 = arith.constant 0.000000e+00 : f32
    %322 = vector.broadcast %cst_47 : f32 to vector<2x8x32xf32>
    %323 = arith.maximumf %321, %322 : vector<2x8x32xf32>
    %324 = arith.addf %323, %301 : vector<2x8x32xf32>
    %325 = vector.broadcast %275 : vector<2x8x1xf32> to vector<2x8x32xf32>
    %326 = arith.mulf %325, %324 : vector<2x8x32xf32>
    %cst_48 = arith.constant 0.000000e+00 : f32
    %327 = vector.broadcast %cst_48 : f32 to vector<2x1x32xf32>
    %328 = vector.extract_strided_slice %326 {offsets = [0, 0, 0], sizes = [2, 7, 32], strides = [1, 1, 1]} : vector<2x8x32xf32> to vector<2x7x32xf32>
    %329 = tpu.concatenate %327, %328 in 1 : vector<2x1x32xf32>, vector<2x7x32xf32> -> vector<2x8x32xf32>
    %330 = vector.extract_strided_slice %326 {offsets = [0, 1, 0], sizes = [2, 7, 32], strides = [1, 1, 1]} : vector<2x8x32xf32> to vector<2x7x32xf32>
    %331 = tpu.concatenate %330, %327 in 1 : vector<2x7x32xf32>, vector<2x1x32xf32> -> vector<2x8x32xf32>
    %332 = tpu.concatenate %329, %326, %331 in 2 : vector<2x8x32xf32>, vector<2x8x32xf32>, vector<2x8x32xf32> -> vector<2x8x96xf32>
    %333 = arith.truncf %332 : vector<2x8x96xf32> to vector<2x8x96xbf16>
    %c0_49 = arith.constant 0 : index
    %c0_50 = arith.constant 0 : index
    %334 = vector.load %arg8[%c0_49, %c0_50] : memref<96x50xf32, #tpu.memory_space<vmem>>, vector<96x50xf32>
    %335 = arith.truncf %334 : vector<96x50xf32> to vector<96x50xbf16>
    %336 = vector.shape_cast %335 : vector<96x50xbf16> to vector<1x96x50xbf16>
    %337 = vector.broadcast %336 : vector<1x96x50xbf16> to vector<2x96x50xbf16>
    %cst_51 = arith.constant dense<0.000000e+00> : vector<2x8x50xf32>
    %338 = tpu.matmul %333, %337, %cst_51 {dimension_numbers = #tpu.dot_dimension_numbers<[2], [1], [1], [2], [0, 0, 0, 1, 1, 2], [0], [0]>} : vector<2x8x96xbf16>, vector<2x96x50xbf16>, vector<2x8x50xf32> -> vector<2x8x50xf32>
    %c0_52 = arith.constant 0 : index
    %c0_53 = arith.constant 0 : index
    %339 = vector.load %arg9[%c0_52, %c0_53] : memref<1x50xf32, #tpu.memory_space<vmem>>, vector<1x50xf32>
    %340 = vector.shape_cast %339 : vector<1x50xf32> to vector<1x1x50xf32>
    %341 = vector.broadcast %340 : vector<1x1x50xf32> to vector<2x8x50xf32>
    %342 = arith.addf %338, %341 : vector<2x8x50xf32>
    %cst_54 = arith.constant 0.000000e+00 : f32
    %343 = vector.broadcast %cst_54 : f32 to vector<2x8x50xf32>
    %344 = arith.maximumf %342, %343 : vector<2x8x50xf32>
    %cst_55 = arith.constant dense<0xFF800000> : vector<2x50xf32>
    %345 = vector.multi_reduction <maximumf>, %344, %cst_55 [1] : vector<2x8x50xf32> to vector<2x50xf32>
    %346 = arith.truncf %345 : vector<2x50xf32> to vector<2x50xbf16>
    %c0_56 = arith.constant 0 : index
    %c0_57 = arith.constant 0 : index
    %347 = vector.load %arg10[%c0_56, %c0_57] : memref<50x3xf32, #tpu.memory_space<vmem>>, vector<50x3xf32>
    %348 = arith.truncf %347 : vector<50x3xf32> to vector<50x3xbf16>
    %cst_58 = arith.constant dense<0.000000e+00> : vector<2x3xf32>
    %349 = tpu.matmul %346, %348, %cst_58 {dimension_numbers = #tpu.dot_dimension_numbers<[1], [0], [0], [1], [0, 0, 1, 1], [], []>} : vector<2x50xbf16>, vector<50x3xbf16>, vector<2x3xf32> -> vector<2x3xf32>
    %c0_59 = arith.constant 0 : index
    %c0_60 = arith.constant 0 : index
    %350 = vector.load %arg11[%c0_59, %c0_60] : memref<1x3xf32, #tpu.memory_space<vmem>>, vector<1x3xf32>
    %351 = vector.broadcast %350 : vector<1x3xf32> to vector<2x3xf32>
    %352 = arith.addf %349, %351 : vector<2x3xf32>
    %c0_61 = arith.constant 0 : index
    %c0_62 = arith.constant 0 : index
    %353 = vector.load %arg12[%c0_61, %c0_62] : memref<2x3xf32, #tpu.memory_space<vmem>>, vector<2x3xf32>
    tpu.vector_store %arg12[%c0_61, %c0_62], %352 {strides = array<i32>} : memref<2x3xf32, #tpu.memory_space<vmem>>, vector<2x3xf32>,
    return
  }
}

</mosaic_0001>

<bundles_post_ra>
// kernel: tnet_lf_forward.1
= control target key start
LH: loop header
LB: loop body
LE: loop exit
PB: predicated region body
PF: predicated region fallthrough
CT: control target
= control target key end

     0   :  { %v2916_v3 = vmov 0   ;;  %s2917_s28 = smov 64   ;;  %vm342_vm0 = vcmask 1041409   ;;  %vm214_vm1 = vcmask 523264   ;;  %vm1326_vm2 = vcmask 1040384   ;;  %s2921_s18 = smov 96   ;;  %s3840_s3 = inlined_call_operand.vmem [shape: f32[128,256], index: 3, kind: input, shape index: {}]   ;;  %s3841_s4 = inlined_call_operand.vmem [shape: f32[64,256], index: 4, kind: input, shape index: {}]   ;;  %s3842_s0 = inlined_call_operand.vmem [shape: f32[2,8,128], index: 0, kind: input, shape index: {}]   ;;  %s3843_s5 = inlined_call_operand.vmem [shape: f32[1,256], index: 5, kind: input, shape index: {}]   ;;  %s3844_s1 = inlined_call_operand.vmem [shape: f32[2,8,64], index: 1, kind: input, shape index: {}]   ;;  %s3845_s6 = inlined_call_operand.vmem [shape: f32[64,32], index: 6, kind: input, shape index: {}]   ;;  %s3846_s2 = inlined_call_operand.vmem [shape: f32[2,8,1], index: 2, kind: input, shape index: {}]   ;;  %s3847_s7 = inlined_call_operand.vmem [shape: f32[1,32], index: 7, kind: input, shape index: {}]   ;;  %s3848_s8 = inlined_call_operand.vmem [shape: f32[96,50], index: 8, kind: input, shape index: {}]   ;;  %s3849_s10 = inlined_call_operand.vmem [shape: f32[50,3], index: 10, kind: input, shape index: {}]   ;;  %s3850_s9 = inlined_call_operand.vmem [shape: f32[1,50], index: 9, kind: input, shape index: {}]   ;;  %s3851_s11 = inlined_call_operand.vmem [shape: f32[1,3], index: 11, kind: input, shape index: {}]   ;;  %s3852_s12 = inlined_call_operand.vmem [shape: f32[2,3], index: 12, kind: output, shape index: {}]  }
   0x1   :  { %v75_v0 = vld [vmem:[%s3840_s3 + $0xe8] sm:$0xff]  ;;  %v77_v1 = vld [vmem:[%s3840_s3 + $0xf8] sm:$0xff]  ;;  %v74_v2 = vld [vmem:[%s3840_s3 + $0xe0] sm:$0xff]  ;;  %138 = vmatprep.mubr.bf16.mxu0 %v2916_v3  ;;  %179 = vmatprep.mubr.bf16.mxu1 %v2916_v3  ;;  %vm1329_vm3 = vcmask 1041408   ;;  %vm1332_vm4 = vcmask 1042432   ;;  %vm1335_vm5 = vcmask 1043456  }
   0x2   :  { %v93_v4 = vpack.c.bf16 %v77_v1, %v75_v0  ;;  %v76_v5 = vld [vmem:[%s3840_s3 + $0xf0] sm:$0xff]  ;;  %v71_v6 = vld [vmem:[%s3840_s3 + $0xc8] sm:$0xff]  ;;  %v73_v7 = vld [vmem:[%s3840_s3 + $0xd8] sm:$0xff]  ;;  %vm1338_vm6 = vcmask 1044480   ;;  %vm1341_vm7 = vcmask 1045504   ;;  %vm1344_vm8 = vcmask 1046528  }
   0x3   :  { %v92_v8 = vpack.c.bf16 %v76_v5, %v74_v2  ;;  %v91_v9 = vpack.c.bf16 %v73_v7, %v71_v6  ;;  %v70_v10 = vld [vmem:[%s3840_s3 + $0xc0] sm:$0xff]  ;;  %v72_v11 = vld [vmem:[%s3840_s3 + $0xd0] sm:$0xff]  ;;  %v67_v12 = vld [vmem:[%s3840_s3 + $0xa8] sm:$0xff]  ;;  %vm2919_vm9 = vmmov 0   ;;  %vm1417_vm10 = vcmask 130048   ;;  %s2922_s19 = smov 32  }
   0x4   :  { %106 = vmatprep.subr.bf16.mxu0 %v93_v4  ;;  %v69_v13 = vld [vmem:[%s3840_s3 + $0xb8] sm:$0xff]  ;;  %147 = vmatprep.subr.bf16.mxu1 %v93_v4  ;;  %v90_v14 = vpack.c.bf16 %v72_v11, %v70_v10  ;;  %v66_v16 = vld [vmem:[%s3840_s3 + $0xa0] sm:$0xff]  ;;  %v68_v17 = vld [vmem:[%s3840_s3 + $0xb0] sm:$0xff]  ;;  %vm1457_vm11 = vcmask 261120   ;;  %vm1550_vm12 = vcmask 60416   ;;  %vm1607_vm13 = vcmask 31744  }
   0x5   :  { %107 = vmatpush1.bf16.msra.mxu0 %v92_v8  ;;  %148 = vmatpush1.bf16.msra.mxu1 %v92_v8  ;;  %v89_v15 = vpack.c.bf16 %v69_v13, %v67_v12  ;;  %v63_v18 = vld [vmem:[%s3840_s3 + $0x88] sm:$0xff]  ;;  %v65_v19 = vld [vmem:[%s3840_s3 + $0x98] sm:$0xff]  ;;  %v88_v20 = vpack.c.bf16 %v68_v17, %v66_v16  ;;  %v62_v22 = vld [vmem:[%s3840_s3 + $0x80] sm:$0xff]  ;;  %vm2243_vm14 = vcmask 785408   ;;  %vm2332_vm15 = vcmask 408576  }
   0x6   :  { %108 = vmatprep.subr.bf16.mxu0 %v91_v9  ;;  %149 = vmatprep.subr.bf16.mxu1 %v91_v9  ;;  %v87_v21 = vpack.c.bf16 %v65_v19, %v63_v18  ;;  %v64_v23 = vld [vmem:[%s3840_s3 + $0x90] sm:$0xff]  ;;  %v59_v24 = vld [vmem:[%s3840_s3 + $0x68] sm:$0xff]  ;;  %v61_v25 = vld [vmem:[%s3840_s3 + $0x78] sm:$0xff] }
   0x7   :  { %v86_v26 = vpack.c.bf16 %v64_v23, %v62_v22  ;;  %v85_v27 = vpack.c.bf16 %v61_v25, %v59_v24  ;;  %v58_v28 = vld [vmem:[%s3840_s3 + $0x60] sm:$0xff]  ;;  %v60_v29 = vld [vmem:[%s3840_s3 + $0x70] sm:$0xff]  ;;  %v55_v30 = vld [vmem:[%s3840_s3 + $0x48] sm:$0xff] }
   0x8   :  { %v57_v31 = vld [vmem:[%s3840_s3 + $0x58] sm:$0xff]  ;;  %v84_v32 = vpack.c.bf16 %v60_v29, %v58_v28  ;;  %v54_v34 = vld [vmem:[%s3840_s3 + $0x40] sm:$0xff]  ;;  %v56_v35 = vld [vmem:[%s3840_s3 + $0x50] sm:$0xff] }
   0x9   :  { %109 = vmatpush1.bf16.msra.mxu0 %v90_v14  ;;  %150 = vmatpush1.bf16.msra.mxu1 %v90_v14  ;;  %v83_v33 = vpack.c.bf16 %v57_v31, %v55_v30  ;;  %v51_v36 = vld [vmem:[%s3840_s3 + $0x28] sm:$0xff]  ;;  %v53_v37 = vld [vmem:[%s3840_s3 + $0x38] sm:$0xff]  ;;  %v82_v38 = vpack.c.bf16 %v56_v35, %v54_v34  ;;  %v50_v40 = vld [vmem:[%s3840_s3 + $0x20] sm:$0xff] }
   0xa   :  { %110 = vmatprep.subr.bf16.mxu0 %v89_v15  ;;  %151 = vmatprep.subr.bf16.mxu1 %v89_v15  ;;  %v81_v39 = vpack.c.bf16 %v53_v37, %v51_v36  ;;  %v52_v41 = vld [vmem:[%s3840_s3 + $0x30] sm:$0xff]  ;;  %v47_v42 = vld [vmem:[%s3840_s3 + $0x8] sm:$0xff]  ;;  %v49_v43 = vld [vmem:[%s3840_s3 + $0x18] sm:$0xff] }
   0xb   :  { %v80_v44 = vpack.c.bf16 %v52_v41, %v50_v40  ;;  %v79_v45 = vpack.c.bf16 %v49_v43, %v47_v42  ;;  %v46_v46 = vld [vmem:[%s3840_s3] sm:$0xff]  ;;  %v48_v47 = vld [vmem:[%s3840_s3 + $0x10] sm:$0xff]  ;;  %v203_v48 = vld [vmem:[%s3841_s4 + $0x68] sm:$0xff] }
   0xc   :  { %v205_v49 = vld [vmem:[%s3841_s4 + $0x78] sm:$0xff]  ;;  %v78_v50 = vpack.c.bf16 %v48_v47, %v46_v46  ;;  %v42_v51 = vld [vmem:[%s3842_s0] sm:$0xff]  ;;  %v43_v52 = vld [vmem:[%s3842_s0 + $0x8] sm:$0xff] }
   0xd   :  { %111 = vmatpush1.bf16.msra.mxu0 %v88_v20  ;;  %152 = vmatpush1.bf16.msra.mxu1 %v88_v20  ;;  %v3098_v53 = vpack.c.bf16 %v205_v49, %v203_v48  ;;  %v202_v54 = vld [vmem:[%s3841_s4 + $0x60] sm:$0xff]  ;;  %v204_v55 = vld [vmem:[%s3841_s4 + $0x70] sm:$0xff]  ;;  %v199_v56 = vld [vmem:[%s3841_s4 + $0x48] sm:$0xff]  ;;  %v44_v58 = vpack.c.bf16 %v42_v51, %v42_v51  ;;  %v45_v59 = vpack.c.bf16 %v43_v52, %v43_v52  ;;  %v96_v20 = vlaneseq }
   0xe   :  { %112 = vmatprep.subr.bf16.mxu0 %v87_v21  ;;  %153 = vmatprep.subr.bf16.mxu1 %v87_v21  ;;  %v201_v57 = vld [vmem:[%s3841_s4 + $0x58] sm:$0xff]  ;;  %v3112_v60 = vpack.c.bf16 %v204_v55, %v202_v54  ;;  %v198_v62 = vld [vmem:[%s3841_s4 + $0x40] sm:$0xff]  ;;  %v200_v63 = vld [vmem:[%s3841_s4 + $0x50] sm:$0xff] }
   0xf   :  { %v3115_v61 = vpack.c.bf16 %v201_v57, %v199_v56  ;;  %v195_v0 = vld [vmem:[%s3841_s4 + $0x28] sm:$0xff]  ;;  %v197_v1 = vld [vmem:[%s3841_s4 + $0x38] sm:$0xff]  ;;  %v3131_v2 = vpack.c.bf16 %v200_v63, %v198_v62  ;;  %v194_v5 = vld [vmem:[%s3841_s4 + $0x20] sm:$0xff]  ;;  %v97_v23 = vshrl.u32 %v96_v20, 7 }
  0x10   :  { %v3135_v4 = vpack.c.bf16 %v197_v1, %v195_v0  ;;  %v196_v6 = vld [vmem:[%s3841_s4 + $0x30] sm:$0xff]  ;;  %v191_v7 = vld [vmem:[%s3841_s4 + $0x8] sm:$0xff]  ;;  %v193_v8 = vld [vmem:[%s3841_s4 + $0x18] sm:$0xff] }
  0x11   :  { %113 = vmatpush1.bf16.msra.mxu0 %v86_v26  ;;  %154 = vmatpush1.bf16.msra.mxu1 %v86_v26  ;;  %v3153_v9 = vpack.c.bf16 %v196_v6, %v194_v5  ;;  %v3156_v10 = vpack.c.bf16 %v193_v8, %v191_v7  ;;  %v190_v11 = vld [vmem:[%s3841_s4] sm:$0xff]  ;;  %v192_v12 = vld [vmem:[%s3841_s4 + $0x10] sm:$0xff]  ;;  %v102_v24 = vsub.s32 1, %v97_v23 }
  0x12   :  { %114 = vmatprep.subr.bf16.mxu0 %v85_v27  ;;  %155 = vmatprep.subr.bf16.mxu1 %v85_v27  ;;  %v3167_v13 = vpack.c.bf16 %v192_v12, %v190_v11  ;;  %v94_v25 = vld [vmem:[%s3843_s5] sm:$0x3]  ;;  %v3210_v11 = vld [vmem:[%s3844_s1 + $0x8] sm:$0xff] }
  0x13   :  { %v103_v27 = vrot.slane %v94_v25, %v102_v24 }
  0x15   :  { %115 = vmatpush1.bf16.msra.mxu0 %v84_v32  ;;  %156 = vmatpush1.bf16.msra.mxu1 %v84_v32 }
  0x16   :  { %116 = vmatprep.subr.bf16.mxu0 %v83_v33  ;;  %157 = vmatprep.subr.bf16.mxu1 %v83_v33 }
  0x19   :  { %117 = vmatpush1.bf16.msra.mxu0 %v82_v38  ;;  %158 = vmatpush1.bf16.msra.mxu1 %v82_v38  ;;  %v98_v38 = vsub.s32 0, %v97_v23 }
  0x1a   :  { %118 = vmatprep.subr.bf16.mxu0 %v81_v39  ;;  %159 = vmatprep.subr.bf16.mxu1 %v81_v39 }
  0x1b   :  { %v99_v39 = vrot.slane %v94_v25, %v98_v38 }
  0x1d   :  { %119 = vmatpush1.bf16.msra.mxu0 %v80_v44  ;;  %160 = vmatpush1.bf16.msra.mxu1 %v80_v44 }
  0x1e   :  { %120 = vmatprep.subr.bf16.mxu0 %v79_v45  ;;  %161 = vmatprep.subr.bf16.mxu1 %v79_v45 }
  0x21   :  { %121 = vmatpush1.bf16.msra.mxu0 %v78_v50  ;;  %162 = vmatpush1.bf16.msra.mxu1 %v78_v50 }
  0x22   :  { %226 = vmatprep.subr.bf16.mxu0 %v3098_v53  ;;  %356 = vmatprep.subr.bf16.mxu1 %v3098_v53 }
  0x24   :  { %139 = vmatmul.mubr.bf16.vlgmr.msra.gmra.mxu0 %v44_v58  ;;  %180 = vmatmul.mubr.bf16.vlgmr.msra.gmra.mxu1 %v45_v59 }
  0x25   :  { %227 = vmatpush1.bf16.msra.mxu0 %v3112_v60  ;;  %250 = vmatprep.mubr.bf16.mxu0 %v2916_v3 }
  0x26   :  { %228 = vmatprep.subr.bf16.mxu0 %v3115_v61  ;;  %357 = vmatpush1.bf16.msra.mxu1 %v3112_v60 }
  0x27   :  { %358 = vmatprep.subr.bf16.mxu1 %v3115_v61  ;;  %380 = vmatprep.mubr.bf16.mxu1 %v2916_v3 }
  0x29   :  { %229 = vmatpush1.bf16.msra.mxu0 %v3131_v2 }
  0x2a   :  { %230 = vmatprep.subr.bf16.mxu0 %v3135_v4  ;;  %359 = vmatpush1.bf16.msra.mxu1 %v3131_v2 }
  0x2b   :  { %360 = vmatprep.subr.bf16.mxu1 %v3135_v4 }
  0x2d   :  { %231 = vmatpush1.bf16.msra.mxu0 %v3153_v9 }
  0x2e   :  { %232 = vmatprep.subr.bf16.mxu0 %v3156_v10  ;;  %361 = vmatpush1.bf16.msra.mxu1 %v3153_v9 }
  0x2f   :  { %362 = vmatprep.subr.bf16.mxu1 %v3156_v10 }
  0x31   :  { %233 = vmatpush1.bf16.msra.mxu0 %v3167_v13 }
  0x32   :  { %363 = vmatpush1.bf16.msra.mxu1 %v3167_v13  ;;  %495 = vmatprep.subr.bf16.mxu0 %v3098_v53 }
  0x33   :  { %637 = vmatprep.subr.bf16.mxu1 %v3098_v53 }
  0x34   :  { %251 = vmatmul.mubr.bf16.vlgmr.msra.gmra.mxu0 %v2916_v3 }
  0x35   :  { %496 = vmatpush1.bf16.msra.mxu0 %v3112_v60  ;;  %519 = vmatprep.mubr.bf16.mxu0 %v2916_v3 }
  0x36   :  { %497 = vmatprep.subr.bf16.mxu0 %v3115_v61 }
  0x39   :  { %498 = vmatpush1.bf16.msra.mxu0 %v3131_v2 }
  0x3a   :  { %499 = vmatprep.subr.bf16.mxu0 %v3135_v4 }
  0x3d   :  { %500 = vmatpush1.bf16.msra.mxu0 %v3153_v9 }
  0x3e   :  { %501 = vmatprep.subr.bf16.mxu0 %v3156_v10 }
  0x41   :  { %502 = vmatpush1.bf16.msra.mxu0 %v3167_v13 }
  0x42   :  { %779 = vmatprep.subr.bf16.mxu0 %v3098_v53 }
  0xe4   :  { %v140_v14 = vpop.f32.mrf.mxu0  ;;  %v181_v15 = vpop.f32.mrf.mxu1 }
  0xe5   :  { %v3197_v40 = vadd.f32 %v181_v15, %v99_v39  ;;  %v3200_v43 = vadd.f32 %v140_v14, %v99_v39 }
  0xe6   :  { %v142_v16 = vpop.f32.mrf.mxu0  ;;  %v183_v17 = vpop.f32.mrf.mxu1 }
  0xe7   :  { %v3189_v30 = vadd.f32 %v183_v17, %v103_v27  ;;  %v3192_v34 = vadd.f32 %v142_v16, %v103_v27  ;;  %v3216_v17 = vld [vmem:[%s3844_s1] sm:$0xff] }
  0xe8   :  { %v144_v18 = vpop.f32.mrf.mxu0  ;;  %v185_v19 = vpop.f32.mrf.mxu1 }
  0xea   :  { %v145_v21 = vpop.f32.mrf.mxu0  ;;  %v186_v22 = vpop.f32.mrf.mxu1 }
  0xf4   :  { %v252_v26 = vpop.f32.mrf.mxu0 }
  0xf5   :  { %v261_v41 = vrot.slane %v252_v26, 1  ;;  %v267_v44 = vadd.f32 %v252_v26, %v3200_v43 }
  0xf6   :  { %v254_v28 = vpop.f32.mrf.mxu0 }
  0xf7   :  { %v262_v29 = vrot.slane %v254_v28, 1  ;;  %v268_v35 = vadd.f32 %v254_v28, %v3192_v34  ;;  %v269_v42 = vadd.f32 %v261_v41, %v3197_v40  ;;  %v2425_v46 = vmul.f32 -1.442695, %v267_v44 }
  0xf8   :  { %v256_v31 = vpop.f32.mrf.mxu0 }
  0xf9   :  { %v270_v32 = vadd.f32 %v262_v29, %v3189_v30  ;;  %v2427_v45 = vmul.f32 -1.442695, %v269_v42  ;;  %v2426_v6 = vmul.f32 -1.442695, %v268_v35 }
  0xfa   :  { %v257_v33 = vpop.f32.mrf.mxu0 }
  0xfb   :  { %2706 = vtanh.f32 %v270_v32  ;;  %v2428_v5 = vmul.f32 -1.442695, %v270_v32 }
  0xfc   :  { %2708 = vtanh.f32 %v268_v35 }
  0xfd   :  { %2710 = vpow2.f32 %v2427_v45 }
  0xfe   :  { %2712 = vpow2.f32 %v2425_v46 }
 0x108   :  { %v2707_v36 = vpop.eup %2706 }
 0x109   :  { %303 = vrot.lane.b32.xlu0 %v2707_v36, %s2917_s28  ;;  %v2709_v37 = vpop.eup %2708 }
 0x10a   :  { %v2711_v47 = vpop.eup %2710 }
 0x10b   :  { %v285_v48 = vadd.f32 1.0, %v2711_v47  ;;  %v2713_v49 = vpop.eup %2712 }
 0x10c   :  { %v283_v50 = vadd.f32 1.0, %v2713_v49 }
 0x10d   :  { %301 = vrot.lane.b32.xlu0 %v2709_v37, %s2917_s28  ;;  %2714 = vrcp.f32 %v285_v48 }
 0x10e   :  { %2716 = vrcp.f32 %v283_v50 }
 0x10f   :  { %2718 = vpow2.f32 %v2428_v5 }
 0x110   :  { %2720 = vpow2.f32 %v2426_v6 }
 0x11a   :  { %v2715_v51 = vpop.eup %2714 }
 0x11b   :  { %v2717_v55 = vpop.eup %2716  ;;  %v298_v58 = vmul.f32 0.0, %v2715_v51 }
 0x11c   :  { %v297_v63 = vmul.f32 0.0, %v2717_v55  ;;  %v2719_v7 = vpop.eup %2718 }
 0x11d   :  { %v286_v8 = vadd.f32 1.0, %v2719_v7  ;;  %v2721_v12 = vpop.eup %2720 }
 0x11e   :  { %v284_v16 = vadd.f32 1.0, %v2721_v12 }
 0x11f   :  { %2722 = vrcp.f32 %v286_v8 }
 0x12c   :  { %v2723_v20 = vpop.eup %2722 }
 0x17b   :  { %v304_v52 = vpop.permute.xlu0 %303 }
 0x17c   :  { %v308_v54 = vmul.f32 %v2715_v51, %v304_v52 }
 0x17e   :  { %313 = vrot.lane.b32.xlu1 %v308_v54, %s2917_s28 }
 0x17f   :  { %v302_v56 = vpop.permute.xlu0 %301 }
 0x180   :  { %v307_v57 = vmul.f32 %v2717_v55, %v302_v56 }
 0x182   :  { %311 = vrot.lane.b32.xlu1 %v307_v57, %s2917_s28 }
 0x1f0   :  { %v314_v59 = vpop.permute.xlu1 %313 }
 0x1f1   :  { %v318_v62 = vadd.f32 %v314_v59, %v298_v58 }
 0x1f3   :  { %323 = vrot.lane.b32.xlu0 %v318_v62, %s2917_s28 }
 0x1f4   :  { %v312_v0 = vpop.permute.xlu1 %311 }
 0x1f5   :  { %v317_v1 = vadd.f32 %v312_v0, %v297_v63 }
 0x1f7   :  { %321 = vrot.lane.b32.xlu1 %v317_v1, %s2917_s28 }
 0x265   :  { %v324_v14 = vpop.permute.xlu0 %323 }
 0x266   :  { %v328_v15 = vmul.f32 %v324_v14, %v3210_v11 }
 0x268   :  { %2724 = vtanh.f32 %v328_v15  ;;  %v430_v47 = vrot.slane %v328_v15, 7 }
 0x269   :  { %v322_v18 = vpop.permute.xlu1 %321  ;;  %2726 = vrcp.f32 %v284_v16 }
 0x26a   :  { %v327_v19 = vmul.f32 %v322_v18, %v3216_v17 }
 0x26c   :  { %2728 = vtanh.f32 %v327_v19  ;;  %v429_v49 = vrot.slane %v327_v19, 7 }
 0x275   :  { %v2725_v21 = vpop.eup %2724 }
 0x276   :  { %v332_v22 = vmul.f32 %v2725_v21, %v2723_v20  ;;  %v2727_v23 = vpop.eup %2726 }
 0x278   :  { %v3220_v24 = vmul.f32 %v332_v22, %v3210_v11 }
 0x279   :  { %v2729_v25 = vpop.eup %2728 }
 0x27a   :  { %v331_v26 = vmul.f32 %v2729_v25, %v2727_v23  ;;  %v336_v27 = vpack.c.bf16 %v3220_v24, %v3220_v24 }
 0x27c   :  { %v3225_v28 = vmul.f32 %v331_v26, %v3216_v17  ;;  %v340_v29 = vunpack.c.l.b16 %v336_v27 }
 0x27e   :  { %v335_v31 = vpack.c.bf16 %v3225_v28, %v3225_v28  ;;  %v341_v33 = vrot.slane %v340_v29, 7 }
 0x280   :  { %v339_v32 = vunpack.c.l.b16 %v335_v31 }
 0x282   :  { %v343_v35 = vsel %vm342_vm0, %v341_v33, %v339_v32 }
 0x283   :  { %v344_v36 = vpack.c.b16 %v343_v35, %v343_v35 }
 0x285   :  { %2429 = vmatmul.mubr.msk.bf16.vlgmr.msra.gmra.mxu1 %vm214_vm1, %v344_v36 }
 0x286   :  { %638 = vmatpush1.bf16.msra.mxu1 %v3112_v60  ;;  %661 = vmatprep.mubr.bf16.mxu1 %v2916_v3 }
 0x287   :  { %639 = vmatprep.subr.bf16.mxu1 %v3115_v61 }
 0x28a   :  { %640 = vmatpush1.bf16.msra.mxu1 %v3131_v2 }
 0x28b   :  { %641 = vmatprep.subr.bf16.mxu1 %v3135_v4 }
 0x28e   :  { %642 = vmatpush1.bf16.msra.mxu1 %v3153_v9 }
 0x28f   :  { %643 = vmatprep.subr.bf16.mxu1 %v3156_v10 }
 0x292   :  { %644 = vmatpush1.bf16.msra.mxu1 %v3167_v13 }
 0x293   :  { %921 = vmatprep.subr.bf16.mxu1 %v3098_v53 }
 0x345   :  { %v382_v37 = vpop.f32.mrf.mxu1 }
 0x346   :  { %v391_v50 = vrot.slane %v382_v37, 7  ;;  %v399_v51 = vadd.f32 %v382_v37, %v3197_v40 }
 0x347   :  { %v384_v38 = vpop.f32.mrf.mxu1 }
 0x348   :  { %v392_v39 = vrot.slane %v384_v38, 7  ;;  %v400_v41 = vadd.f32 %v384_v38, %v3189_v30  ;;  %v397_v52 = vadd.f32 %v391_v50, %v3200_v43  ;;  %v2432_v54 = vmul.f32 -1.442695, %v399_v51 }
 0x349   :  { %v386_v42 = vpop.f32.mrf.mxu1 }
 0x34a   :  { %v398_v44 = vadd.f32 %v392_v39, %v3192_v34  ;;  %2730 = vtanh.f32 %v400_v41  ;;  %v2430_v55 = vmul.f32 -1.442695, %v397_v52  ;;  %v2433_v20 = vmul.f32 -1.442695, %v400_v41 }
 0x34b   :  { %v387_v45 = vpop.f32.mrf.mxu1 }
 0x34c   :  { %2732 = vtanh.f32 %v398_v44  ;;  %v2431_v21 = vmul.f32 -1.442695, %v398_v44 }
 0x34d   :  { %2734 = vpow2.f32 %v2432_v54 }
 0x34e   :  { %2736 = vpow2.f32 %v2430_v55 }
 0x357   :  { %v2731_v46 = vpop.eup %2730 }
 0x358   :  { %443 = vrot.lane.b32.xlu1 %v2731_v46, %s2917_s28 }
 0x359   :  { %v2733_v48 = vpop.eup %2732 }
 0x35a   :  { %441 = vrot.lane.b32.xlu0 %v2733_v48, %s2917_s28  ;;  %v2735_v56 = vpop.eup %2734 }
 0x35b   :  { %v415_v57 = vadd.f32 1.0, %v2735_v56  ;;  %v2737_v58 = vpop.eup %2736 }
 0x35c   :  { %433 = vrot.lane.b32.xlu1 %v430_v47, %s2917_s28  ;;  %v413_v59 = vadd.f32 1.0, %v2737_v58 }
 0x35d   :  { %2738 = vrcp.f32 %v415_v57 }
 0x35e   :  { %431 = vrot.lane.b32.xlu0 %v429_v49, %s2917_s28  ;;  %2740 = vrcp.f32 %v413_v59 }
 0x35f   :  { %2742 = vpow2.f32 %v2433_v20 }
 0x360   :  { %2744 = vpow2.f32 %v2431_v21 }
 0x36a   :  { %v2739_v62 = vpop.eup %2738 }
 0x36b   :  { %v2741_v1 = vpop.eup %2740 }
 0x36c   :  { %v2743_v22 = vpop.eup %2742 }
 0x36d   :  { %v416_v23 = vadd.f32 1.0, %v2743_v22  ;;  %v2745_v25 = vpop.eup %2744 }
 0x36e   :  { %v414_v29 = vadd.f32 1.0, %v2745_v25 }
 0x36f   :  { %2746 = vrcp.f32 %v416_v23 }
 0x37c   :  { %v2747_v33 = vpop.eup %2746 }
 0x3ca   :  { %v444_v63 = vpop.permute.xlu1 %443 }
 0x3cb   :  { %v448_v0 = vmul.f32 %v2739_v62, %v444_v63 }
 0x3cc   :  { %v442_v5 = vpop.permute.xlu0 %441 }
 0x3cd   :  { %453 = vrot.lane.b32.xlu1 %v448_v0, %s2917_s28  ;;  %v447_v6 = vmul.f32 %v2741_v1, %v442_v5 }
 0x3ce   :  { %v434_v7 = vpop.permute.xlu1 %433 }
 0x3cf   :  { %451 = vrot.lane.b32.xlu0 %v447_v6, %s2917_s28  ;;  %v438_v8 = vmul.f32 %v2739_v62, %v434_v7 }
 0x3d0   :  { %v432_v12 = vpop.permute.xlu0 %431 }
 0x3d1   :  { %v437_v16 = vmul.f32 %v2741_v1, %v432_v12 }
 0x43f   :  { %v454_v14 = vpop.permute.xlu1 %453 }
 0x440   :  { %v458_v15 = vadd.f32 %v454_v14, %v438_v8 }
 0x441   :  { %v452_v18 = vpop.permute.xlu0 %451 }
 0x442   :  { %463 = vrot.lane.b32.xlu1 %v458_v15, %s2917_s28  ;;  %v457_v19 = vadd.f32 %v452_v18, %v437_v16 }
 0x444   :  { %461 = vrot.lane.b32.xlu0 %v457_v19, %s2917_s28 }
 0x4b4   :  { %v464_v26 = vpop.permute.xlu1 %463 }
 0x4b5   :  { %v468_v27 = vmul.f32 %v464_v26, %v3210_v11 }
 0x4b6   :  { %v462_v31 = vpop.permute.xlu0 %461 }
 0x4b7   :  { %2748 = vtanh.f32 %v468_v27  ;;  %v467_v32 = vmul.f32 %v462_v31, %v3216_v17  ;;  %v571_v1 = vrot.slane %v468_v27, 7 }
 0x4b8   :  { %2750 = vrcp.f32 %v414_v29 }
 0x4b9   :  { %2752 = vtanh.f32 %v467_v32  ;;  %v570_v0 = vrot.slane %v467_v32, 7 }
 0x4c4   :  { %v2749_v35 = vpop.eup %2748 }
 0x4c5   :  { %v472_v36 = vmul.f32 %v2749_v35, %v2747_v33  ;;  %v2751_v37 = vpop.eup %2750 }
 0x4c6   :  { %v2753_v38 = vpop.eup %2752 }
 0x4c7   :  { %v3255_v39 = vmul.f32 %v472_v36, %v3210_v11  ;;  %v471_v41 = vmul.f32 %v2753_v38, %v2751_v37 }
 0x4c9   :  { %v3258_v42 = vmul.f32 %v471_v41, %v3216_v17  ;;  %v476_v45 = vpack.c.bf16 %v3255_v39, %v3255_v39 }
 0x4cb   :  { %v475_v44 = vpack.c.bf16 %v3258_v42, %v3258_v42  ;;  %v480_v47 = vunpack.c.l.b16 %v476_v45 }
 0x4cd   :  { %v479_v46 = vunpack.c.l.b16 %v475_v44 }
 0x4cf   :  { %v481_v48 = vrot.slane %v479_v46, 1 }
 0x4d1   :  { %v482_v49 = vsel %vm342_vm0, %v480_v47, %v481_v48 }
 0x4d2   :  { %v483_v50 = vpack.c.b16 %v482_v49, %v482_v49 }
 0x4d4   :  { %2434 = vmatmul.mubr.msk.bf16.vlgmr.msra.gmra.mxu0 %vm214_vm1, %v483_v50 }
 0x4d5   :  { %780 = vmatpush1.bf16.msra.mxu0 %v3112_v60  ;;  %803 = vmatprep.mubr.bf16.mxu0 %v2916_v3 }
 0x4d6   :  { %781 = vmatprep.subr.bf16.mxu0 %v3115_v61 }
 0x4d9   :  { %782 = vmatpush1.bf16.msra.mxu0 %v3131_v2 }
 0x4da   :  { %783 = vmatprep.subr.bf16.mxu0 %v3135_v4 }
 0x4dd   :  { %784 = vmatpush1.bf16.msra.mxu0 %v3153_v9 }
 0x4de   :  { %785 = vmatprep.subr.bf16.mxu0 %v3156_v10 }
 0x4e1   :  { %786 = vmatpush1.bf16.msra.mxu0 %v3167_v13 }
 0x4e2   :  { %1063 = vmatprep.subr.bf16.mxu0 %v3098_v53 }
 0x594   :  { %v521_v51 = vpop.f32.mrf.mxu0 }
 0x595   :  { %v530_v5 = vrot.slane %v521_v51, 6  ;;  %v532_v6 = vrot.slane %v521_v51, 7 }
 0x596   :  { %v523_v52 = vpop.f32.mrf.mxu0 }
 0x597   :  { %v531_v54 = vrot.slane %v523_v52, 6  ;;  %v533_v55 = vrot.slane %v523_v52, 7  ;;  %v538_v7 = vadd.f32 %v530_v5, %v3200_v43  ;;  %v540_v8 = vadd.f32 %v532_v6, %v3197_v40 }
 0x598   :  { %v525_v56 = vpop.f32.mrf.mxu0  ;;  %v1328_v5 = vsel %vm1326_vm2, %v3220_v24, %v3255_v39 }
 0x599   :  { %v539_v58 = vadd.f32 %v531_v54, %v3192_v34  ;;  %v541_v59 = vadd.f32 %v533_v55, %v3189_v30  ;;  %v2435_v12 = vmul.f32 -1.442695, %v538_v7  ;;  %v2437_v14 = vmul.f32 -1.442695, %v540_v8 }
 0x59a   :  { %v526_v57 = vpop.f32.mrf.mxu0 }
 0x59b   :  { %2754 = vtanh.f32 %v539_v58  ;;  %v2436_v38 = vmul.f32 -1.442695, %v539_v58  ;;  %v2438_v41 = vmul.f32 -1.442695, %v541_v59 }
 0x59c   :  { %2756 = vtanh.f32 %v541_v59 }
 0x59d   :  { %2758 = vpow2.f32 %v2435_v12 }
 0x59e   :  { %2760 = vpow2.f32 %v2437_v14 }
 0x5a8   :  { %v2755_v62 = vpop.eup %2754 }
 0x5a9   :  { %v2757_v63 = vpop.eup %2756  ;;  %582 = vrot.lane.b32.xlu0 %v2755_v62, %s2917_s28 }
 0x5aa   :  { %584 = vrot.lane.b32.xlu1 %v2757_v63, %s2917_s28  ;;  %v2759_v15 = vpop.eup %2758  ;;  %v1327_v63 = vsel %vm1326_vm2, %v3225_v28, %v3258_v42 }
 0x5ab   :  { %v2761_v16 = vpop.eup %2760  ;;  %v554_v18 = vadd.f32 1.0, %v2759_v15 }
 0x5ac   :  { %v556_v19 = vadd.f32 1.0, %v2761_v16 }
 0x5ad   :  { %572 = vrot.lane.b32.xlu0 %v570_v0, %s2917_s28  ;;  %2762 = vrcp.f32 %v554_v18 }
 0x5ae   :  { %574 = vrot.lane.b32.xlu1 %v571_v1, %s2917_s28  ;;  %2764 = vrcp.f32 %v556_v19 }
 0x5af   :  { %2766 = vpow2.f32 %v2436_v38 }
 0x5b0   :  { %2768 = vpow2.f32 %v2438_v41 }
 0x5ba   :  { %v2763_v20 = vpop.eup %2762 }
 0x5bb   :  { %v2765_v22 = vpop.eup %2764 }
 0x5bc   :  { %v2767_v44 = vpop.eup %2766 }
 0x5bd   :  { %v2769_v45 = vpop.eup %2768  ;;  %v555_v46 = vadd.f32 1.0, %v2767_v44 }
 0x5be   :  { %v557_v47 = vadd.f32 1.0, %v2769_v45 }
 0x5bf   :  { %2770 = vrcp.f32 %v555_v46 }
 0x5c0   :  { %2772 = vrcp.f32 %v557_v47 }
 0x5cc   :  { %v2771_v52 = vpop.eup %2770 }
 0x5cd   :  { %v2773_v54 = vpop.eup %2772 }
 0x61b   :  { %v583_v21 = vpop.permute.xlu0 %582 }
 0x61c   :  { %v585_v23 = vpop.permute.xlu1 %584  ;;  %v588_v25 = vmul.f32 %v2763_v20, %v583_v21 }
 0x61d   :  { %v589_v26 = vmul.f32 %v2765_v22, %v585_v23 }
 0x61e   :  { %592 = vrot.lane.b32.xlu0 %v588_v25, %s2917_s28 }
 0x61f   :  { %594 = vrot.lane.b32.xlu1 %v589_v26, %s2917_s28  ;;  %v573_v27 = vpop.permute.xlu0 %572 }
 0x620   :  { %v575_v29 = vpop.permute.xlu1 %574  ;;  %v578_v31 = vmul.f32 %v2763_v20, %v573_v27 }
 0x621   :  { %v579_v32 = vmul.f32 %v2765_v22, %v575_v29 }
 0x690   :  { %v593_v33 = vpop.permute.xlu0 %592 }
 0x691   :  { %v595_v35 = vpop.permute.xlu1 %594  ;;  %v598_v36 = vadd.f32 %v593_v33, %v578_v31 }
 0x692   :  { %v599_v37 = vadd.f32 %v595_v35, %v579_v32 }
 0x693   :  { %602 = vrot.lane.b32.xlu0 %v598_v36, %s2917_s28 }
 0x694   :  { %604 = vrot.lane.b32.xlu1 %v599_v37, %s2917_s28 }
 0x705   :  { %v603_v48 = vpop.permute.xlu0 %602 }
 0x706   :  { %v605_v49 = vpop.permute.xlu1 %604  ;;  %v608_v50 = vmul.f32 %v603_v48, %v3216_v17 }
 0x707   :  { %v609_v51 = vmul.f32 %v605_v49, %v3210_v11 }
 0x708   :  { %2774 = vtanh.f32 %v608_v50  ;;  %v712_v32 = vrot.slane %v608_v50, 7 }
 0x709   :  { %2776 = vtanh.f32 %v609_v51 }
 0x715   :  { %v2775_v55 = vpop.eup %2774 }
 0x716   :  { %v2777_v56 = vpop.eup %2776  ;;  %v612_v57 = vmul.f32 %v2775_v55, %v2771_v52 }
 0x717   :  { %v613_v58 = vmul.f32 %v2777_v56, %v2773_v54 }
 0x718   :  { %v3290_v59 = vmul.f32 %v612_v57, %v3216_v17 }
 0x719   :  { %v3293_v62 = vmul.f32 %v613_v58, %v3210_v11 }
 0x71a   :  { %v616_v0 = vpack.c.bf16 %v3290_v59, %v3290_v59  ;;  %v3302_v1 = vsel %vm1329_vm3, %v1327_v63, %v3290_v59 }
 0x71b   :  { %v617_v6 = vpack.c.bf16 %v3293_v62, %v3293_v62  ;;  %v3311_v7 = vsel %vm1329_vm3, %v1328_v5, %v3293_v62 }
 0x71c   :  { %v620_v8 = vunpack.c.l.b16 %v616_v0 }
 0x71d   :  { %v621_v12 = vunpack.c.l.b16 %v617_v6 }
 0x71e   :  { %v622_v14 = vrot.slane %v620_v8, 2 }
 0x71f   :  { %v623_v15 = vrot.slane %v621_v12, 1 }
 0x721   :  { %v624_v16 = vsel %vm342_vm0, %v623_v15, %v622_v14 }
 0x722   :  { %v625_v18 = vpack.c.b16 %v624_v16, %v624_v16 }
 0x724   :  { %2439 = vmatmul.mubr.msk.bf16.vlgmr.msra.gmra.mxu1 %vm214_vm1, %v625_v18 }
 0x725   :  { %922 = vmatpush1.bf16.msra.mxu1 %v3112_v60  ;;  %945 = vmatprep.mubr.bf16.mxu1 %v2916_v3 }
 0x726   :  { %923 = vmatprep.subr.bf16.mxu1 %v3115_v61 }
 0x729   :  { %924 = vmatpush1.bf16.msra.mxu1 %v3131_v2 }
 0x72a   :  { %925 = vmatprep.subr.bf16.mxu1 %v3135_v4 }
 0x72d   :  { %926 = vmatpush1.bf16.msra.mxu1 %v3153_v9 }
 0x72e   :  { %927 = vmatprep.subr.bf16.mxu1 %v3156_v10 }
 0x731   :  { %928 = vmatpush1.bf16.msra.mxu1 %v3167_v13 }
 0x732   :  { %1205 = vmatprep.subr.bf16.mxu1 %v3098_v53  ;;  %v713_v53 = vrot.slane %v609_v51, 7 }
 0x7e4   :  { %v663_v19 = vpop.f32.mrf.mxu1 }
 0x7e5   :  { %v672_v33 = vrot.slane %v663_v19, 5  ;;  %v674_v35 = vrot.slane %v663_v19, 6 }
 0x7e6   :  { %v665_v20 = vpop.f32.mrf.mxu1 }
 0x7e7   :  { %v673_v21 = vrot.slane %v665_v20, 5  ;;  %v675_v22 = vrot.slane %v665_v20, 6  ;;  %v680_v36 = vadd.f32 %v672_v33, %v3200_v43  ;;  %v682_v37 = vadd.f32 %v674_v35, %v3197_v40 }
 0x7e8   :  { %v667_v23 = vpop.f32.mrf.mxu1 }
 0x7e9   :  { %v681_v26 = vadd.f32 %v673_v21, %v3192_v34  ;;  %v683_v27 = vadd.f32 %v675_v22, %v3189_v30  ;;  %v2440_v38 = vmul.f32 -1.442695, %v680_v36  ;;  %v2442_v41 = vmul.f32 -1.442695, %v682_v37 }
 0x7ea   :  { %v668_v25 = vpop.f32.mrf.mxu1 }
 0x7eb   :  { %2778 = vtanh.f32 %v681_v26  ;;  %v2441_v8 = vmul.f32 -1.442695, %v681_v26  ;;  %v2443_v12 = vmul.f32 -1.442695, %v683_v27 }
 0x7ec   :  { %2780 = vtanh.f32 %v683_v27 }
 0x7ed   :  { %2782 = vpow2.f32 %v2440_v38 }
 0x7ee   :  { %2784 = vpow2.f32 %v2442_v41 }
 0x7f8   :  { %v2779_v29 = vpop.eup %2778 }
 0x7f9   :  { %v2781_v31 = vpop.eup %2780  ;;  %724 = vrot.lane.b32.xlu0 %v2779_v29, %s2917_s28 }
 0x7fa   :  { %726 = vrot.lane.b32.xlu1 %v2781_v31, %s2917_s28  ;;  %v2783_v44 = vpop.eup %2782 }
 0x7fb   :  { %v2785_v45 = vpop.eup %2784  ;;  %v696_v46 = vadd.f32 1.0, %v2783_v44 }
 0x7fc   :  { %v698_v47 = vadd.f32 1.0, %v2785_v45 }
 0x7fd   :  { %714 = vrot.lane.b32.xlu0 %v712_v32, %s2917_s28  ;;  %2786 = vrcp.f32 %v696_v46 }
 0x7fe   :  { %716 = vrot.lane.b32.xlu1 %v713_v53, %s2917_s28  ;;  %2788 = vrcp.f32 %v698_v47 }
 0x7ff   :  { %2790 = vpow2.f32 %v2441_v8 }
 0x800   :  { %2792 = vpow2.f32 %v2443_v12 }
 0x80a   :  { %v2787_v48 = vpop.eup %2786 }
 0x80b   :  { %v2789_v50 = vpop.eup %2788 }
 0x80c   :  { %v2791_v14 = vpop.eup %2790 }
 0x80d   :  { %v2793_v15 = vpop.eup %2792  ;;  %v697_v16 = vadd.f32 1.0, %v2791_v14 }
 0x80e   :  { %v699_v18 = vadd.f32 1.0, %v2793_v15 }
 0x80f   :  { %2794 = vrcp.f32 %v697_v16 }
 0x810   :  { %2796 = vrcp.f32 %v699_v18 }
 0x81c   :  { %v2795_v23 = vpop.eup %2794 }
 0x81d   :  { %v2797_v25 = vpop.eup %2796 }
 0x86b   :  { %v725_v49 = vpop.permute.xlu0 %724 }
 0x86c   :  { %v727_v51 = vpop.permute.xlu1 %726  ;;  %v730_v52 = vmul.f32 %v2787_v48, %v725_v49 }
 0x86d   :  { %v731_v54 = vmul.f32 %v2789_v50, %v727_v51 }
 0x86e   :  { %734 = vrot.lane.b32.xlu0 %v730_v52, %s2917_s28 }
 0x86f   :  { %736 = vrot.lane.b32.xlu1 %v731_v54, %s2917_s28  ;;  %v715_v55 = vpop.permute.xlu0 %714 }
 0x870   :  { %v717_v56 = vpop.permute.xlu1 %716  ;;  %v720_v57 = vmul.f32 %v2787_v48, %v715_v55 }
 0x871   :  { %v721_v58 = vmul.f32 %v2789_v50, %v717_v56 }
 0x8e0   :  { %v735_v63 = vpop.permute.xlu0 %734 }
 0x8e1   :  { %v737_v0 = vpop.permute.xlu1 %736  ;;  %v740_v5 = vadd.f32 %v735_v63, %v720_v57 }
 0x8e2   :  { %v741_v6 = vadd.f32 %v737_v0, %v721_v58 }
 0x8e3   :  { %744 = vrot.lane.b32.xlu0 %v740_v5, %s2917_s28 }
 0x8e4   :  { %746 = vrot.lane.b32.xlu1 %v741_v6, %s2917_s28 }
 0x955   :  { %v745_v19 = vpop.permute.xlu0 %744 }
 0x956   :  { %v747_v20 = vpop.permute.xlu1 %746  ;;  %v750_v21 = vmul.f32 %v745_v19, %v3216_v17 }
 0x957   :  { %v751_v22 = vmul.f32 %v747_v20, %v3210_v11 }
 0x958   :  { %2798 = vtanh.f32 %v750_v21  ;;  %v854_v57 = vrot.slane %v750_v21, 7 }
 0x959   :  { %2800 = vtanh.f32 %v751_v22  ;;  %v855_v58 = vrot.slane %v751_v22, 7 }
 0x965   :  { %v2799_v26 = vpop.eup %2798 }
 0x966   :  { %v2801_v27 = vpop.eup %2800  ;;  %v754_v29 = vmul.f32 %v2799_v26, %v2795_v23 }
 0x967   :  { %v755_v31 = vmul.f32 %v2801_v27, %v2797_v25 }
 0x968   :  { %v3339_v32 = vmul.f32 %v754_v29, %v3216_v17 }
 0x969   :  { %v3342_v53 = vmul.f32 %v755_v31, %v3210_v11 }
 0x96a   :  { %v758_v33 = vpack.c.bf16 %v3339_v32, %v3339_v32  ;;  %v3349_v35 = vsel %vm1332_vm4, %v3302_v1, %v3339_v32 }
 0x96b   :  { %v759_v36 = vpack.c.bf16 %v3342_v53, %v3342_v53  ;;  %v3356_v37 = vsel %vm1332_vm4, %v3311_v7, %v3342_v53 }
 0x96c   :  { %v762_v38 = vunpack.c.l.b16 %v758_v33 }
 0x96d   :  { %v763_v41 = vunpack.c.l.b16 %v759_v36 }
 0x96e   :  { %v764_v44 = vrot.slane %v762_v38, 3 }
 0x96f   :  { %v765_v45 = vrot.slane %v763_v41, 2 }
 0x971   :  { %v766_v46 = vsel %vm342_vm0, %v765_v45, %v764_v44 }
 0x972   :  { %v767_v47 = vpack.c.b16 %v766_v46, %v766_v46 }
 0x974   :  { %2444 = vmatmul.mubr.msk.bf16.vlgmr.msra.gmra.mxu0 %vm214_vm1, %v767_v47 }
 0x975   :  { %1064 = vmatpush1.bf16.msra.mxu0 %v3112_v60  ;;  %1087 = vmatprep.mubr.bf16.mxu0 %v2916_v3 }
 0x976   :  { %1065 = vmatprep.subr.bf16.mxu0 %v3115_v61 }
 0x979   :  { %1066 = vmatpush1.bf16.msra.mxu0 %v3131_v2 }
 0x97a   :  { %1067 = vmatprep.subr.bf16.mxu0 %v3135_v4 }
 0x97d   :  { %1068 = vmatpush1.bf16.msra.mxu0 %v3153_v9 }
 0x97e   :  { %1069 = vmatprep.subr.bf16.mxu0 %v3156_v10 }
 0x981   :  { %1070 = vmatpush1.bf16.msra.mxu0 %v3167_v13 }
 0xa34   :  { %v805_v1 = vpop.f32.mrf.mxu0 }
 0xa35   :  { %v814_v63 = vrot.slane %v805_v1, 4  ;;  %v816_v0 = vrot.slane %v805_v1, 5 }
 0xa36   :  { %v807_v7 = vpop.f32.mrf.mxu0 }
 0xa37   :  { %v815_v48 = vrot.slane %v807_v7, 4  ;;  %v817_v49 = vrot.slane %v807_v7, 5  ;;  %v822_v5 = vadd.f32 %v814_v63, %v3200_v43  ;;  %v824_v6 = vadd.f32 %v816_v0, %v3197_v40 }
 0xa38   :  { %v809_v50 = vpop.f32.mrf.mxu0 }
 0xa39   :  { %v823_v52 = vadd.f32 %v815_v48, %v3192_v34  ;;  %v825_v54 = vadd.f32 %v817_v49, %v3189_v30  ;;  %v2445_v8 = vmul.f32 -1.442695, %v822_v5  ;;  %v2447_v12 = vmul.f32 -1.442695, %v824_v6 }
 0xa3a   :  { %v810_v51 = vpop.f32.mrf.mxu0 }
 0xa3b   :  { %2802 = vtanh.f32 %v823_v52  ;;  %v2446_v44 = vmul.f32 -1.442695, %v823_v52  ;;  %v2448_v45 = vmul.f32 -1.442695, %v825_v54 }
 0xa3c   :  { %2804 = vtanh.f32 %v825_v54 }
 0xa3d   :  { %2806 = vpow2.f32 %v2445_v8 }
 0xa3e   :  { %2808 = vpow2.f32 %v2447_v12 }
 0xa48   :  { %v2803_v55 = vpop.eup %2802 }
 0xa49   :  { %v2805_v56 = vpop.eup %2804  ;;  %866 = vrot.lane.b32.xlu0 %v2803_v55, %s2917_s28 }
 0xa4a   :  { %868 = vrot.lane.b32.xlu1 %v2805_v56, %s2917_s28  ;;  %v2807_v14 = vpop.eup %2806 }
 0xa4b   :  { %v2809_v15 = vpop.eup %2808  ;;  %v838_v16 = vadd.f32 1.0, %v2807_v14 }
 0xa4c   :  { %v840_v18 = vadd.f32 1.0, %v2809_v15 }
 0xa4d   :  { %856 = vrot.lane.b32.xlu0 %v854_v57, %s2917_s28  ;;  %2810 = vrcp.f32 %v838_v16 }
 0xa4e   :  { %858 = vrot.lane.b32.xlu1 %v855_v58, %s2917_s28  ;;  %2812 = vrcp.f32 %v840_v18 }
 0xa4f   :  { %2814 = vpow2.f32 %v2446_v44 }
 0xa50   :  { %2816 = vpow2.f32 %v2448_v45 }
 0xa5a   :  { %v2811_v19 = vpop.eup %2810 }
 0xa5b   :  { %v2813_v21 = vpop.eup %2812 }
 0xa5c   :  { %v2815_v46 = vpop.eup %2814 }
 0xa5d   :  { %v2817_v47 = vpop.eup %2816  ;;  %v839_v1 = vadd.f32 1.0, %v2815_v46 }
 0xa5e   :  { %v841_v7 = vadd.f32 1.0, %v2817_v47 }
 0xa5f   :  { %2818 = vrcp.f32 %v839_v1 }
 0xa60   :  { %2820 = vrcp.f32 %v841_v7 }
 0xa6c   :  { %v2819_v55 = vpop.eup %2818 }
 0xa6d   :  { %v2821_v56 = vpop.eup %2820 }
 0xabb   :  { %v867_v20 = vpop.permute.xlu0 %866 }
 0xabc   :  { %v869_v22 = vpop.permute.xlu1 %868  ;;  %v872_v23 = vmul.f32 %v2811_v19, %v867_v20 }
 0xabd   :  { %v873_v25 = vmul.f32 %v2813_v21, %v869_v22 }
 0xabe   :  { %876 = vrot.lane.b32.xlu0 %v872_v23, %s2917_s28 }
 0xabf   :  { %878 = vrot.lane.b32.xlu1 %v873_v25, %s2917_s28  ;;  %v857_v26 = vpop.permute.xlu0 %856 }
 0xac0   :  { %v859_v27 = vpop.permute.xlu1 %858  ;;  %v862_v29 = vmul.f32 %v2811_v19, %v857_v26 }
 0xac1   :  { %v863_v31 = vmul.f32 %v2813_v21, %v859_v27 }
 0xb30   :  { %v877_v33 = vpop.permute.xlu0 %876 }
 0xb31   :  { %v879_v36 = vpop.permute.xlu1 %878  ;;  %v882_v38 = vadd.f32 %v877_v33, %v862_v29 }
 0xb32   :  { %v883_v41 = vadd.f32 %v879_v36, %v863_v31 }
 0xb33   :  { %886 = vrot.lane.b32.xlu0 %v882_v38, %s2917_s28 }
 0xb34   :  { %888 = vrot.lane.b32.xlu1 %v883_v41, %s2917_s28 }
 0xba5   :  { %v887_v48 = vpop.permute.xlu0 %886 }
 0xba6   :  { %v889_v49 = vpop.permute.xlu1 %888  ;;  %v892_v50 = vmul.f32 %v887_v48, %v3216_v17 }
 0xba7   :  { %v893_v51 = vmul.f32 %v889_v49, %v3210_v11 }
 0xba8   :  { %2822 = vtanh.f32 %v892_v50 }
 0xba9   :  { %2824 = vtanh.f32 %v893_v51 }
 0xbb5   :  { %v2823_v52 = vpop.eup %2822 }
 0xbb6   :  { %v2825_v54 = vpop.eup %2824  ;;  %v896_v57 = vmul.f32 %v2823_v52, %v2819_v55 }
 0xbb7   :  { %v897_v58 = vmul.f32 %v2825_v54, %v2821_v56 }
 0xbb8   :  { %v3383_v63 = vmul.f32 %v896_v57, %v3216_v17 }
 0xbb9   :  { %v3386_v0 = vmul.f32 %v897_v58, %v3210_v11 }
 0xbba   :  { %v900_v5 = vpack.c.bf16 %v3383_v63, %v3383_v63 }
 0xbbb   :  { %v901_v6 = vpack.c.bf16 %v3386_v0, %v3386_v0 }
 0xbbc   :  { %v904_v8 = vunpack.c.l.b16 %v900_v5 }
 0xbbd   :  { %v905_v12 = vunpack.c.l.b16 %v901_v6 }
 0xbbe   :  { %v906_v14 = vrot.slane %v904_v8, 4 }
 0xbbf   :  { %v907_v15 = vrot.slane %v905_v12, 3 }
 0xbc1   :  { %v908_v16 = vsel %vm342_vm0, %v907_v15, %v906_v14 }
 0xbc2   :  { %v909_v18 = vpack.c.b16 %v908_v16, %v908_v16 }
 0xbc4   :  { %2449 = vmatmul.mubr.msk.bf16.vlgmr.msra.gmra.mxu1 %vm214_vm1, %v909_v18 }
 0xbc5   :  { %1206 = vmatpush1.bf16.msra.mxu1 %v3112_v60  ;;  %1229 = vmatprep.mubr.bf16.mxu1 %v2916_v3 }
 0xbc6   :  { %1207 = vmatprep.subr.bf16.mxu1 %v3115_v61 }
 0xbc9   :  { %1208 = vmatpush1.bf16.msra.mxu1 %v3131_v2 }
 0xbca   :  { %1209 = vmatprep.subr.bf16.mxu1 %v3135_v4 }
 0xbcd   :  { %1210 = vmatpush1.bf16.msra.mxu1 %v3153_v9  ;;  %v996_v9 = vrot.slane %v892_v50, 7 }
 0xbce   :  { %1211 = vmatprep.subr.bf16.mxu1 %v3156_v10  ;;  %v997_v10 = vrot.slane %v893_v51, 7 }
 0xbd1   :  { %1212 = vmatpush1.bf16.msra.mxu1 %v3167_v13 }
 0xc84   :  { %v947_v19 = vpop.f32.mrf.mxu1 }
 0xc85   :  { %v956_v13 = vrot.slane %v947_v19, 3  ;;  %v958_v26 = vrot.slane %v947_v19, 4 }
 0xc86   :  { %v949_v20 = vpop.f32.mrf.mxu1 }
 0xc87   :  { %v957_v21 = vrot.slane %v949_v20, 3  ;;  %v959_v22 = vrot.slane %v949_v20, 4  ;;  %v964_v27 = vadd.f32 %v956_v13, %v3200_v43  ;;  %v966_v29 = vadd.f32 %v958_v26, %v3197_v40 }
 0xc88   :  { %v951_v23 = vpop.f32.mrf.mxu1  ;;  %v1337_v13 = vsel %vm1335_vm5, %v3356_v37, %v3386_v0 }
 0xc89   :  { %v965_v25 = vadd.f32 %v957_v21, %v3192_v34  ;;  %v967_v61 = vadd.f32 %v959_v22, %v3189_v30  ;;  %v2450_v31 = vmul.f32 -1.442695, %v964_v27  ;;  %v2452_v33 = vmul.f32 -1.442695, %v966_v29 }
 0xc8a   :  { %v952_v60 = vpop.f32.mrf.mxu1 }
 0xc8b   :  { %2826 = vtanh.f32 %v965_v25  ;;  %v2451_v58 = vmul.f32 -1.442695, %v965_v25  ;;  %v2453_v5 = vmul.f32 -1.442695, %v967_v61 }
 0xc8c   :  { %2828 = vtanh.f32 %v967_v61 }
 0xc8d   :  { %2830 = vpow2.f32 %v2450_v31 }
 0xc8e   :  { %2832 = vpow2.f32 %v2452_v33 }
 0xc98   :  { %v2827_v2 = vpop.eup %2826 }
 0xc99   :  { %v2829_v4 = vpop.eup %2828  ;;  %1008 = vrot.lane.b32.xlu0 %v2827_v2, %s2917_s28 }
 0xc9a   :  { %1010 = vrot.lane.b32.xlu1 %v2829_v4, %s2917_s28  ;;  %v2831_v36 = vpop.eup %2830  ;;  %v1336_v4 = vsel %vm1335_vm5, %v3349_v35, %v3383_v63 }
 0xc9b   :  { %v2833_v38 = vpop.eup %2832  ;;  %v980_v41 = vadd.f32 1.0, %v2831_v36 }
 0xc9c   :  { %v982_v44 = vadd.f32 1.0, %v2833_v38 }
 0xc9d   :  { %998 = vrot.lane.b32.xlu0 %v996_v9, %s2917_s28  ;;  %2834 = vrcp.f32 %v980_v41 }
 0xc9e   :  { %1000 = vrot.lane.b32.xlu1 %v997_v10, %s2917_s28  ;;  %2836 = vrcp.f32 %v982_v44 }
 0xc9f   :  { %2838 = vpow2.f32 %v2451_v58 }
 0xca0   :  { %2840 = vpow2.f32 %v2453_v5 }
 0xcaa   :  { %v2835_v45 = vpop.eup %2834 }
 0xcab   :  { %v2837_v47 = vpop.eup %2836 }
 0xcac   :  { %v2839_v6 = vpop.eup %2838 }
 0xcad   :  { %v2841_v8 = vpop.eup %2840  ;;  %v981_v12 = vadd.f32 1.0, %v2839_v6 }
 0xcae   :  { %v983_v14 = vadd.f32 1.0, %v2841_v8 }
 0xcaf   :  { %2842 = vrcp.f32 %v981_v12 }
 0xcb0   :  { %2844 = vrcp.f32 %v983_v14 }
 0xcbc   :  { %v2843_v20 = vpop.eup %2842 }
 0xcbd   :  { %v2845_v21 = vpop.eup %2844 }
 0xd0b   :  { %v1009_v46 = vpop.permute.xlu0 %1008 }
 0xd0c   :  { %v1011_v1 = vpop.permute.xlu1 %1010  ;;  %v1014_v7 = vmul.f32 %v2835_v45, %v1009_v46 }
 0xd0d   :  { %v1015_v48 = vmul.f32 %v2837_v47, %v1011_v1 }
 0xd0e   :  { %1018 = vrot.lane.b32.xlu0 %v1014_v7, %s2917_s28 }
 0xd0f   :  { %1020 = vrot.lane.b32.xlu1 %v1015_v48, %s2917_s28  ;;  %v999_v49 = vpop.permute.xlu0 %998 }
 0xd10   :  { %v1001_v50 = vpop.permute.xlu1 %1000  ;;  %v1004_v51 = vmul.f32 %v2835_v45, %v999_v49 }
 0xd11   :  { %v1005_v55 = vmul.f32 %v2837_v47, %v1001_v50 }
 0xd80   :  { %v1019_v56 = vpop.permute.xlu0 %1018 }
 0xd81   :  { %v1021_v52 = vpop.permute.xlu1 %1020  ;;  %v1024_v54 = vadd.f32 %v1019_v56, %v1004_v51 }
 0xd82   :  { %v1025_v57 = vadd.f32 %v1021_v52, %v1005_v55 }
 0xd83   :  { %1028 = vrot.lane.b32.xlu0 %v1024_v54, %s2917_s28 }
 0xd84   :  { %1030 = vrot.lane.b32.xlu1 %v1025_v57, %s2917_s28 }
 0xdf5   :  { %v1029_v15 = vpop.permute.xlu0 %1028 }
 0xdf6   :  { %v1031_v16 = vpop.permute.xlu1 %1030  ;;  %v1034_v18 = vmul.f32 %v1029_v15, %v3216_v17 }
 0xdf7   :  { %v1035_v19 = vmul.f32 %v1031_v16, %v3210_v11 }
 0xdf8   :  { %2846 = vtanh.f32 %v1034_v18  ;;  %v1138_v50 = vrot.slane %v1034_v18, 7 }
 0xdf9   :  { %2848 = vtanh.f32 %v1035_v19  ;;  %v1139_v51 = vrot.slane %v1035_v19, 7 }
 0xe05   :  { %v2847_v22 = vpop.eup %2846 }
 0xe06   :  { %v2849_v23 = vpop.eup %2848  ;;  %v1038_v60 = vmul.f32 %v2847_v22, %v2843_v20 }
 0xe07   :  { %v1039_v25 = vmul.f32 %v2849_v23, %v2845_v21 }
 0xe08   :  { %v3417_v61 = vmul.f32 %v1038_v60, %v3216_v17 }
 0xe09   :  { %v3420_v2 = vmul.f32 %v1039_v25, %v3210_v11 }
 0xe0a   :  { %v1042_v9 = vpack.c.bf16 %v3417_v61, %v3417_v61  ;;  %v3429_v10 = vsel %vm1338_vm6, %v1336_v4, %v3417_v61 }
 0xe0b   :  { %v1043_v17 = vpack.c.bf16 %v3420_v2, %v3420_v2  ;;  %v3438_v11 = vsel %vm1338_vm6, %v1337_v13, %v3420_v2 }
 0xe0c   :  { %v1046_v26 = vunpack.c.l.b16 %v1042_v9 }
 0xe0d   :  { %v1047_v27 = vunpack.c.l.b16 %v1043_v17 }
 0xe0e   :  { %v1048_v29 = vrot.slane %v1046_v26, 5 }
 0xe0f   :  { %v1049_v31 = vrot.slane %v1047_v27, 4 }
 0xe11   :  { %v1050_v33 = vsel %vm342_vm0, %v1049_v31, %v1048_v29 }
 0xe12   :  { %v1051_v36 = vpack.c.b16 %v1050_v33, %v1050_v33 }
 0xe14   :  { %2454 = vmatmul.mubr.msk.bf16.vlgmr.msra.gmra.mxu0 %vm214_vm1, %v1051_v36 }
 0xed4   :  { %v1089_v38 = vpop.f32.mrf.mxu0 }
 0xed5   :  { %v1098_v55 = vrot.slane %v1089_v38, 2  ;;  %v1100_v56 = vrot.slane %v1089_v38, 3 }
 0xed6   :  { %v1091_v41 = vpop.f32.mrf.mxu0 }
 0xed7   :  { %v1099_v44 = vrot.slane %v1091_v41, 2  ;;  %v1101_v45 = vrot.slane %v1091_v41, 3  ;;  %v1106_v52 = vadd.f32 %v1098_v55, %v3200_v43  ;;  %v1108_v54 = vadd.f32 %v1100_v56, %v3197_v40  ;;  %v3457_v41 = vld [vmem:[%s3844_s1] sm:$0xff] }
 0xed8   :  { %v1093_v46 = vpop.f32.mrf.mxu0 }
 0xed9   :  { %v1107_v1 = vadd.f32 %v1099_v44, %v3192_v34  ;;  %v1109_v7 = vadd.f32 %v1101_v45, %v3189_v30  ;;  %v2455_v57 = vmul.f32 -1.442695, %v1106_v52  ;;  %v2457_v58 = vmul.f32 -1.442695, %v1108_v54  ;;  %v3463_v45 = vld [vmem:[%s3844_s1 + $0x8] sm:$0xff]  ;;  %s2920_s1 = smov 112  }
 0xeda   :  { %v1094_v47 = vpop.f32.mrf.mxu0 }
 0xedb   :  { %2850 = vtanh.f32 %v1107_v1  ;;  %v2456_v17 = vmul.f32 -1.442695, %v1107_v1  ;;  %v2458_v26 = vmul.f32 -1.442695, %v1109_v7 }
 0xedc   :  { %2852 = vtanh.f32 %v1109_v7 }
 0xedd   :  { %2854 = vpow2.f32 %v2455_v57 }
 0xede   :  { %2856 = vpow2.f32 %v2457_v58 }
 0xee8   :  { %v2851_v48 = vpop.eup %2850 }
 0xee9   :  { %v2853_v49 = vpop.eup %2852  ;;  %1150 = vrot.lane.b32.xlu0 %v2851_v48, %s2917_s28 }
 0xeea   :  { %1152 = vrot.lane.b32.xlu1 %v2853_v49, %s2917_s28  ;;  %v2855_v5 = vpop.eup %2854 }
 0xeeb   :  { %v2857_v6 = vpop.eup %2856  ;;  %v1122_v8 = vadd.f32 1.0, %v2855_v5 }
 0xeec   :  { %v1124_v12 = vadd.f32 1.0, %v2857_v6 }
 0xeed   :  { %1140 = vrot.lane.b32.xlu0 %v1138_v50, %s2917_s28  ;;  %2858 = vrcp.f32 %v1122_v8 }
 0xeee   :  { %1142 = vrot.lane.b32.xlu1 %v1139_v51, %s2917_s28  ;;  %2860 = vrcp.f32 %v1124_v12 }
 0xeef   :  { %2862 = vpow2.f32 %v2456_v17 }
 0xef0   :  { %2864 = vpow2.f32 %v2458_v26 }
 0xefa   :  { %v2859_v14 = vpop.eup %2858 }
 0xefb   :  { %v2861_v16 = vpop.eup %2860 }
 0xefc   :  { %v2863_v27 = vpop.eup %2862 }
 0xefd   :  { %v2865_v29 = vpop.eup %2864  ;;  %v1123_v31 = vadd.f32 1.0, %v2863_v27 }
 0xefe   :  { %v1125_v33 = vadd.f32 1.0, %v2865_v29 }
 0xeff   :  { %2866 = vrcp.f32 %v1123_v31 }
 0xf00   :  { %2868 = vrcp.f32 %v1125_v33 }
 0xf0c   :  { %v2867_v47 = vpop.eup %2866 }
 0xf0d   :  { %v2869_v1 = vpop.eup %2868 }
 0xf5b   :  { %v1151_v15 = vpop.permute.xlu0 %1150 }
 0xf5c   :  { %v1153_v18 = vpop.permute.xlu1 %1152  ;;  %v1156_v19 = vmul.f32 %v2859_v14, %v1151_v15 }
 0xf5d   :  { %v1157_v20 = vmul.f32 %v2861_v16, %v1153_v18 }
 0xf5e   :  { %1160 = vrot.lane.b32.xlu0 %v1156_v19, %s2917_s28 }
 0xf5f   :  { %1162 = vrot.lane.b32.xlu1 %v1157_v20, %s2917_s28  ;;  %v1141_v21 = vpop.permute.xlu0 %1140 }
 0xf60   :  { %v1143_v22 = vpop.permute.xlu1 %1142  ;;  %v1146_v23 = vmul.f32 %v2859_v14, %v1141_v21 }
 0xf61   :  { %v1147_v60 = vmul.f32 %v2861_v16, %v1143_v22 }
 0xfd0   :  { %v1161_v25 = vpop.permute.xlu0 %1160 }
 0xfd1   :  { %v1163_v4 = vpop.permute.xlu1 %1162  ;;  %v1166_v9 = vadd.f32 %v1161_v25, %v1146_v23 }
 0xfd2   :  { %v1167_v13 = vadd.f32 %v1163_v4, %v1147_v60 }
 0xfd3   :  { %1170 = vrot.lane.b32.xlu0 %v1166_v9, %s2917_s28 }
 0xfd4   :  { %1172 = vrot.lane.b32.xlu1 %v1167_v13, %s2917_s28 }
0x1045   :  { %v1171_v36 = vpop.permute.xlu0 %1170 }
0x1046   :  { %v1173_v38 = vpop.permute.xlu1 %1172  ;;  %v1176_v44 = vmul.f32 %v3457_v41, %v1171_v36 }
0x1047   :  { %v1177_v46 = vmul.f32 %v3463_v45, %v1173_v38 }
0x1048   :  { %2870 = vtanh.f32 %v1176_v44  ;;  %v1280_v60 = vrot.slane %v1176_v44, 7 }
0x1049   :  { %2872 = vtanh.f32 %v1177_v46  ;;  %v1281_v25 = vrot.slane %v1177_v46, 7 }
0x1055   :  { %v2871_v7 = vpop.eup %2870 }
0x1056   :  { %v2873_v48 = vpop.eup %2872  ;;  %v1180_v49 = vmul.f32 %v2871_v7, %v2867_v47 }
0x1057   :  { %v1181_v50 = vmul.f32 %v2873_v48, %v2869_v1 }
0x1058   :  { %v3467_v51 = vmul.f32 %v3457_v41, %v1180_v49 }
0x1059   :  { %v3470_v55 = vmul.f32 %v3463_v45, %v1181_v50 }
0x105a   :  { %v1184_v56 = vpack.c.bf16 %v3467_v51, %v3467_v51  ;;  %v3477_v52 = vsel %vm1341_vm7, %v3429_v10, %v3467_v51 }
0x105b   :  { %v1185_v54 = vpack.c.bf16 %v3470_v55, %v3470_v55  ;;  %v3484_v57 = vsel %vm1341_vm7, %v3438_v11, %v3470_v55 }
0x105c   :  { %v1188_v58 = vunpack.c.l.b16 %v1184_v56 }
0x105d   :  { %v1189_v5 = vunpack.c.l.b16 %v1185_v54 }
0x105e   :  { %v1190_v6 = vrot.slane %v1188_v58, 6 }
0x105f   :  { %v1191_v8 = vrot.slane %v1189_v5, 5 }
0x1061   :  { %v1192_v12 = vsel %vm342_vm0, %v1191_v8, %v1190_v6 }
0x1062   :  { %v1193_v14 = vpack.c.b16 %v1192_v12, %v1192_v12 }
0x1064   :  { %2459 = vmatmul.mubr.msk.bf16.vlgmr.msra.gmra.mxu1 %vm214_vm1, %v1193_v14 }
0x1124   :  { %v1231_v15 = vpop.f32.mrf.mxu1 }
0x1125   :  { %v1240_v4 = vrot.slane %v1231_v15, 1  ;;  %v1242_v9 = vrot.slane %v1231_v15, 2 }
0x1126   :  { %v1233_v10 = vpop.f32.mrf.mxu1 }
0x1127   :  { %v1241_v16 = vrot.slane %v1233_v10, 1  ;;  %v1243_v18 = vrot.slane %v1233_v10, 2 }
0x1128   :  { %v1235_v19 = vpop.f32.mrf.mxu1 }
0x1129   :  { %v1249_v21 = vadd.f32 %v1241_v16, %v3192_v34  ;;  %v1251_v11 = vadd.f32 %v1243_v18, %v3189_v30  ;;  %v1248_v34 = vadd.f32 %v1240_v4, %v3200_v43  ;;  %v1250_v30 = vadd.f32 %v1242_v9, %v3197_v40 }
0x112a   :  { %v1236_v20 = vpop.f32.mrf.mxu1  ;;  %v1355_v4 = vrot.slane %v3467_v51, 5 }
0x112b   :  { %2874 = vtanh.f32 %v1249_v21  ;;  %v2460_v13 = vmul.f32 -1.442695, %v1248_v34  ;;  %v2462_v17 = vmul.f32 -1.442695, %v1250_v30  ;;  %v2461_v54 = vmul.f32 -1.442695, %v1249_v21 }
0x112c   :  { %2876 = vtanh.f32 %v1251_v11  ;;  %v2463_v58 = vmul.f32 -1.442695, %v1251_v11  ;;  %v1361_v34 = vrot.slane %v3417_v61, 3 }
0x112d   :  { %2878 = vpow2.f32 %v2460_v13  ;;  %v1367_v13 = vrot.slane %v3383_v63, 1 }
0x112e   :  { %2880 = vpow2.f32 %v2462_v17  ;;  %v1373_v17 = vrot.slane %v3339_v32, 7  ;;  %v1391_v32 = vrot.slane %v3225_v28, 1 }
0x1138   :  { %v2875_v22 = vpop.eup %2874 }
0x1139   :  { %v2877_v23 = vpop.eup %2876  ;;  %1292 = vrot.lane.b32.xlu0 %v2875_v22, %s2917_s28  ;;  %v2918_v22 = vmov 0.0  }
0x113a   :  { %1294 = vrot.lane.b32.xlu1 %v2877_v23, %s2917_s28  ;;  %v2879_v26 = vpop.eup %2878  ;;  %2537 = vmatprep.subr.bf16.mxu1 %v2918_v22 }
0x113b   :  { %v1264_v27 = vadd.f32 1.0, %v2879_v26  ;;  %v2881_v29 = vpop.eup %2880  ;;  %2549 = vmatprep.subr.bf16.mxu0 %v2918_v22  ;;  %v1379_v26 = vrot.slane %v3290_v59, 5  ;;  %2539 = vmatprep.mubr.msk.bf16.mxu1 %vm2919_vm9, %v2918_v22 }
0x113c   :  { %v1266_v31 = vadd.f32 1.0, %v2881_v29  ;;  %2551 = vmatprep.mubr.msk.bf16.mxu0 %vm2919_vm9, %v2918_v22 }
0x113d   :  { %1282 = vrot.lane.b32.xlu0 %v1280_v60, %s2917_s28  ;;  %2882 = vrcp.f32 %v1264_v27 }
0x113e   :  { %2884 = vrcp.f32 %v1266_v31  ;;  %v1356_v31 = vrot.slane %v3470_v55, 5  ;;  %v1374_v55 = vrot.slane %v3342_v53, 7 }
0x113f   :  { %2886 = vpow2.f32 %v2461_v54 }
0x1140   :  { %2888 = vpow2.f32 %v2463_v58 }
0x1141   :  { %1284 = vrot.lane.b32.xlu0 %v1281_v25, %s2917_s28 }
0x114a   :  { %v2883_v33 = vpop.eup %2882 }
0x114b   :  { %v2885_v46 = vpop.eup %2884 }
0x114c   :  { %v2887_v5 = vpop.eup %2886 }
0x114d   :  { %v1265_v6 = vadd.f32 1.0, %v2887_v5  ;;  %v2889_v8 = vpop.eup %2888 }
0x114e   :  { %v1267_v15 = vadd.f32 1.0, %v2889_v8 }
0x114f   :  { %2890 = vrcp.f32 %v1265_v6 }
0x115c   :  { %v2891_v18 = vpop.eup %2890 }
0x11ab   :  { %v1293_v36 = vpop.permute.xlu0 %1292 }
0x11ac   :  { %v1298_v38 = vmul.f32 %v2883_v33, %v1293_v36  ;;  %v1295_v44 = vpop.permute.xlu1 %1294 }
0x11ad   :  { %v1299_v43 = vmul.f32 %v2885_v46, %v1295_v44 }
0x11ae   :  { %1302 = vrot.lane.b32.xlu1 %v1298_v38, %s2917_s28  ;;  %v1386_v38 = vrot.slane %v3255_v39, 3 }
0x11af   :  { %v1283_v40 = vpop.permute.xlu0 %1282 }
0x11b0   :  { %v1288_v47 = vmul.f32 %v2883_v33, %v1283_v40  ;;  %v1368_v33 = vrot.slane %v3386_v0, 1 }
0x11b2   :  { %1304 = vrot.lane.b32.xlu1 %v1299_v43, %s2917_s28 }
0x11b3   :  { %v1285_v1 = vpop.permute.xlu0 %1284 }
0x11b4   :  { %v1289_v49 = vmul.f32 %v2885_v46, %v1285_v1  ;;  %v1392_v46 = vrot.slane %v3220_v24, 1 }
0x1220   :  { %v1303_v7 = vpop.permute.xlu1 %1302 }
0x1221   :  { %v1308_v48 = vadd.f32 %v1303_v7, %v1288_v47 }
0x1223   :  { %1312 = vrot.lane.b32.xlu0 %v1308_v48, %s2917_s28 }
0x1224   :  { %v1305_v50 = vpop.permute.xlu1 %1304 }
0x1225   :  { %v1309_v56 = vadd.f32 %v1305_v50, %v1289_v49 }
0x1227   :  { %1314 = vrot.lane.b32.xlu1 %v1309_v56, %s2917_s28 }
0x1295   :  { %v1313_v12 = vpop.permute.xlu0 %1312 }
0x1296   :  { %v1318_v14 = vmul.f32 %v3457_v41, %v1313_v12 }
0x1298   :  { %2892 = vtanh.f32 %v1318_v14 }
0x1299   :  { %v1315_v10 = vpop.permute.xlu1 %1314  ;;  %2894 = vrcp.f32 %v1267_v15 }
0x129a   :  { %v1319_v16 = vmul.f32 %v3463_v45, %v1315_v10 }
0x129c   :  { %2896 = vtanh.f32 %v1319_v16 }
0x12a5   :  { %v2893_v19 = vpop.eup %2892 }
0x12a6   :  { %v1322_v20 = vmul.f32 %v2893_v19, %v2891_v18  ;;  %v2895_v21 = vpop.eup %2894 }
0x12a8   :  { %v1324_v11 = vmul.f32 %v3457_v41, %v1322_v20 }
0x12a9   :  { %v2897_v23 = vpop.eup %2896 }
0x12aa   :  { %v1349_v60 = vrot.slane %v1324_v11, 7  ;;  %v1323_v25 = vmul.f32 %v2897_v23, %v2895_v21  ;;  %v1345_v9 = vsel %vm1344_vm8, %v3477_v52, %v1324_v11  ;;  %v1362_v52 = vrot.slane %v3420_v2, 3 }
0x12ac   :  { %v1325_v30 = vmul.f32 %v3463_v45, %v1323_v25  ;;  %v1395_v41 = vsel %vm1326_vm2, %v1349_v60, %v1355_v4  ;;  %v1385_v45 = vrot.slane %v3258_v42, 3 }
0x12ad   :  { %v1397_v27 = vsel %vm1329_vm3, %v1395_v41, %v1361_v34 }
0x12ae   :  { %v1350_v29 = vrot.slane %v1325_v30, 7  ;;  %v1399_v51 = vsel %vm1332_vm4, %v1397_v27, %v1367_v13  ;;  %v1346_v61 = vsel %vm1344_vm8, %v3484_v57, %v1325_v30  ;;  %v1380_v57 = vrot.slane %v3293_v62, 5 }
0x12af   :  { %v1401_v63 = vsel %vm1335_vm5, %v1399_v51, %v1373_v17 }
0x12b0   :  { %v1403_v59 = vsel %vm1338_vm6, %v1401_v63, %v1379_v26  ;;  %v1396_v36 = vsel %vm1326_vm2, %v1350_v29, %v1356_v31 }
0x12b1   :  { %v1405_v42 = vsel %vm1341_vm7, %v1403_v59, %v1385_v45  ;;  %v1398_v2 = vsel %vm1329_vm3, %v1396_v36, %v1362_v52 }
0x12b2   :  { %v1407_v28 = vsel %vm1344_vm8, %v1405_v42, %v1391_v32  ;;  %v1400_v0 = vsel %vm1332_vm4, %v1398_v2, %v1368_v33 }
0x12b3   :  { %1411 = vrot.lane.b32.xlu0 %v1407_v28, %s2920_s1  ;;  %v1402_v44 = vsel %vm1335_vm5, %v1400_v0, %v1374_v55 }
0x12b4   :  { %v1404_v43 = vsel %vm1338_vm6, %v1402_v44, %v1380_v57 }
0x12b5   :  { %v1406_v53 = vsel %vm1341_vm7, %v1404_v43, %v1386_v38 }
0x12b6   :  { %v1408_v40 = vsel %vm1344_vm8, %v1406_v53, %v1392_v46 }
0x12b7   :  { %1413 = vrot.lane.b32.xlu1 %v1408_v40, %s2920_s1  ;;  %1422 = vrot.lane.b32.xlu0 %v3349_v35, %s2920_s1 }
0x12bb   :  { %1430 = vrot.lane.b32.xlu1 %v1399_v51, %s2921_s18  ;;  %1424 = vrot.lane.b32.xlu0 %v3356_v37, %s2920_s1 }
0x12bf   :  { %1432 = vrot.lane.b32.xlu1 %v1400_v0, %s2921_s18 }
0x1325   :  { %v1412_v39 = vpop.permute.xlu0 %1411 }
0x1326   :  { %v3545_v62 = vsel %vm1417_vm10, %v1345_v9, %v1412_v39 }
0x1327   :  { %v1455_v24 = vpack.c.bf16 %v3545_v62, %v3545_v62 }
0x1329   :  { %v1414_v47 = vpop.permute.xlu1 %1413  ;;  %v1462_v1 = vsel %vm1457_vm11, %v1455_v24, 0  ;;  %v1423_v35 = vpop.permute.xlu0 %1422 }
0x132a   :  { %v3551_v7 = vsel %vm1417_vm10, %v1346_v61, %v1414_v47  ;;  %2538 = vmatpush3.bf16.xpose.msra.mxu1 %v1462_v1 }
0x132b   :  { %2543 = vmatprep.subr.bf16.mxu1 %v2918_v22  ;;  %v1456_v37 = vpack.c.bf16 %v3551_v7, %v3551_v7 }
0x132d   :  { %v1431_v48 = vpop.permute.xlu1 %1430  ;;  %v1425_v56 = vpop.permute.xlu0 %1424  ;;  %v1508_v58 = vsel %vm1457_vm11, %v1456_v37, 0  ;;  %v1444_v37 = vld [vmem:[%s3845_s6 + $0x30] sm:$0xff] }
0x132e   :  { %v1436_v49 = vsel %vm1417_vm10, %v1423_v35, %v1431_v48  ;;  %v2684_v35 = vpack.i.bf16 %v3551_v7, %v3545_v62  ;;  %v1445_v48 = vld [vmem:[%s3845_s6 + $0x38] sm:$0xff] }
0x132f   :  { %v3557_v50 = vpack.c.bf16 %v1436_v49, %v1436_v49  ;;  %v3599_v49 = vpack.c.bf16 %v1445_v48, %v1444_v37 }
0x1331   :  { %v1433_v54 = vpop.permute.xlu1 %1432  ;;  %2540 = vmatmul.mubr.msk.bf16.vlgmr.msra.gmra.mxu1 %vm1457_vm11, %v3557_v50  ;;  %v3564_v5 = vsel %vm1329_vm3, %v3557_v50, 0 }
0x1332   :  { %v1437_v6 = vsel %vm1417_vm10, %v1425_v56, %v1433_v54  ;;  %2544 = vmatpush3.bf16.xpose.msra.mxu1 %v1508_v58  ;;  %2550 = vmatpush3.bf16.msra.mxu0 %v3564_v5  ;;  %v1442_v56 = vld [vmem:[%s3845_s6 + $0x20] sm:$0xff]  ;;  %v1443_v54 = vld [vmem:[%s3845_s6 + $0x28] sm:$0xff] }
0x1333   :  { %2545 = vmatprep.mubr.msk.bf16.mxu1 %vm2919_vm9, %v2918_v22  ;;  %2555 = vmatprep.subr.bf16.mxu1 %v2918_v22  ;;  %v3572_v8 = vpack.c.bf16 %v1437_v6, %v1437_v6  ;;  %v3609_v58 = vpack.c.bf16 %v1443_v54, %v1442_v56  ;;  %v1440_v6 = vld [vmem:[%s3845_s6 + $0x10] sm:$0xff] }
0x1334   :  { %2561 = vmatprep.subr.bf16.mxu0 %v2918_v22 }
0x1335   :  { %v3578_v12 = vsel %vm1329_vm3, %v3572_v8, 0 }
0x1339   :  { %2546 = vmatmul.mubr.msk.bf16.vlgmr.msra.gmra.mxu1 %vm1457_vm11, %v3572_v8 }
0x133a   :  { %2556 = vmatpush3.bf16.msra.mxu1 %v3578_v12  ;;  %2557 = vmatprep.mubr.msk.bf16.mxu1 %vm2919_vm9, %v2918_v22 }
0x133b   :  { %2573 = vmatprep.subr.bf16.mxu1 %v2918_v22 }
0x13f1   :  { %v1498_v14 = vpop.f32.mrf.mxu1 }
0x13f2   :  { %v1551_v15 = vsel %vm1550_vm12, %v1498_v14, -inf }
0x13f3   :  { %v1552_v10 = vrot.slane %v1551_v15, 4  ;;  %v2541_v16 = vpop.f32.mrf.mxu1 }
0x13f4   :  { %v1438_v16 = vld [vmem:[%s3845_s6] sm:$0xff] }
0x13f5   :  { %v1553_v18 = vmax.f32 %v1551_v15, %v1552_v10  ;;  %v1501_v19 = vpop.f32.mrf.mxu1 }
0x13f7   :  { %v1554_v20 = vrot.slane %v1553_v18, 2  ;;  %v2542_v21 = vpop.f32.mrf.mxu1 }
0x13f8   :  { %v1452_v21 = vld [vmem:[%s3846_s2 + $0x8] sm:$0xff] }
0x13f9   :  { %v1555_v11 = vmax.f32 %v1553_v18, %v1554_v20  ;;  %v1544_v23 = vpop.f32.mrf.mxu1  ;;  %v1439_v18 = vld [vmem:[%s3845_s6 + $0x8] sm:$0xff]  ;;  %v1451_v20 = vld [vmem:[%s3846_s2] sm:$0xff] }
0x13fa   :  { %v1558_v60 = vsel %vm1550_vm12, %v1544_v23, -inf  ;;  %v3641_v19 = vpack.c.bf16 %v1439_v18, %v1438_v16 }
0x13fb   :  { %v1556_v25 = vrot.slane %v1555_v11, 1  ;;  %v1559_v4 = vrot.slane %v1558_v60, 4  ;;  %v2547_v9 = vpop.f32.mrf.mxu1 }
0x13fd   :  { %v1557_v34 = vmax.f32 %v1555_v11, %v1556_v25  ;;  %v1560_v30 = vmax.f32 %v1558_v60, %v1559_v4  ;;  %v1547_v13 = vpop.f32.mrf.mxu1 }
0x13ff   :  { %v1565_v41 = vsub.f32 %v1498_v14, %v1557_v34  ;;  %v1561_v17 = vrot.slane %v1560_v30, 2  ;;  %v2548_v26 = vpop.f32.mrf.mxu1  ;;  %v1441_v14 = vld [vmem:[%s3845_s6 + $0x18] sm:$0xff] }
0x1400   :  { %v3621_v15 = vpack.c.bf16 %v1441_v14, %v1440_v6 }
0x1401   :  { %v1567_v27 = vmul.f32 1.442695, %v1565_v41  ;;  %v1562_v29 = vmax.f32 %v1560_v30, %v1561_v17 }
0x1403   :  { %2898 = vpow2.f32 %v1567_v27  ;;  %v1563_v51 = vrot.slane %v1562_v29, 1 }
0x1405   :  { %v1564_v31 = vmax.f32 %v1562_v29, %v1563_v51 }
0x1407   :  { %v1566_v61 = vsub.f32 %v1544_v23, %v1564_v31  ;;  %v3664_v31 = vld [vmem:[%s3847_s7] ss:$0 sm:$0xff] }
0x1409   :  { %v1569_v45 = vmul.f32 1.442695, %v1566_v61 }
0x140b   :  { %2900 = vpow2.f32 %v1569_v45 }
0x1410   :  { %v2899_v63 = vpop.eup %2898 }
0x1411   :  { %v1571_v52 = vsel %vm1550_vm12, %v2899_v63, 0.0 }
0x1412   :  { %v1572_v32 = vrot.slane %v1571_v52, 4 }
0x1414   :  { %v1573_v59 = vadd.f32 %v1572_v32, %v1571_v52 }
0x1416   :  { %v1574_v33 = vrot.slane %v1573_v59, 2 }
0x1418   :  { %v2901_v36 = vpop.eup %2900  ;;  %v1575_v42 = vadd.f32 %v1574_v33, %v1573_v59 }
0x1419   :  { %v1578_v55 = vsel %vm1550_vm12, %v2901_v36, 0.0 }
0x141a   :  { %v1579_v2 = vrot.slane %v1578_v55, 4  ;;  %v1576_v28 = vrot.slane %v1575_v42, 1 }
0x141c   :  { %v1580_v57 = vadd.f32 %v1579_v2, %v1578_v55  ;;  %v1577_v0 = vadd.f32 %v1576_v28, %v1575_v42 }
0x141e   :  { %v1581_v38 = vrot.slane %v1580_v57, 2  ;;  %2902 = vrcp.f32 %v1577_v0 }
0x1420   :  { %v1582_v44 = vadd.f32 %v1581_v38, %v1580_v57 }
0x1422   :  { %v1583_v46 = vrot.slane %v1582_v44, 1 }
0x1424   :  { %v1584_v43 = vadd.f32 %v1583_v46, %v1582_v44 }
0x1426   :  { %2904 = vrcp.f32 %v1584_v43 }
0x142b   :  { %v2903_v53 = vpop.eup %2902 }
0x142c   :  { %v1587_v40 = vmul.f32 %v2903_v53, %v2899_v63 }
0x142e   :  { %v1589_v39 = vpack.c.bf16 %v1587_v40, %v1587_v40 }
0x1430   :  { %1591 = vxpose.xlu0.c.b16.start.end [1/1] (short) (narrow) %v1589_v39, 16 }
0x1433   :  { %v2905_v24 = vpop.eup %2904 }
0x1434   :  { %v1588_v47 = vmul.f32 %v2905_v24, %v2901_v36 }
0x1436   :  { %v1590_v1 = vpack.c.bf16 %v1588_v47, %v1588_v47 }
0x1438   :  { %1653 = vxpose.xlu1.c.b16.start.end [1/1] (short) (narrow) %v1590_v1, 16 }
0x1439   :  { %2685 = vrot.lane.b32.xlu0 %v2684_v35, %s2922_s19 }
0x143a   :  { %2690 = vset.pattern.permute.xlu0 %v2916_v3 }
0x143c   :  { %2689 = vset.pattern.permute.xlu1 %v2916_v3 }
0x143d   :  { %1824 = vperm.xlu1 %2689, %v1451_v20   ;;  %1829 = vperm.xlu0 %2690, %v1452_v21  }
0x1492   :  { %v1599_v3 = vpop.trf.xlu0 }
0x1493   :  { %2552 = vmatmul.mubr.msk.bf16.vlgmr.msra.gmra.mxu0 %vm1607_vm13, %v1599_v3 }
0x1494   :  { %2562 = vmatpush3.bf16.msra.mxu0 %v3599_v49  ;;  %2569 = vmatprep.mubr.msk.bf16.mxu0 %vm2919_vm9, %v2918_v22 }
0x1495   :  { %2563 = vmatprep.subr.bf16.mxu0 %v2918_v22 }
0x1498   :  { %2564 = vmatpush3.bf16.msra.mxu0 %v3609_v58 }
0x1499   :  { %2565 = vmatprep.subr.bf16.mxu0 %v2918_v22 }
0x149a   :  { %v1661_v10 = vpop.trf.xlu1 }
0x149b   :  { %2558 = vmatmul.mubr.msk.bf16.vlgmr.msra.gmra.mxu1 %vm1607_vm13, %v1661_v10 }
0x149c   :  { %2566 = vmatpush3.bf16.msra.mxu0 %v3621_v15  ;;  %2574 = vmatpush3.bf16.msra.mxu1 %v3599_v49 }
0x149d   :  { %2567 = vmatprep.subr.bf16.mxu0 %v2918_v22  ;;  %2575 = vmatprep.subr.bf16.mxu1 %v2918_v22 }
0x149e   :  { %2581 = vmatprep.mubr.msk.bf16.mxu1 %vm2919_vm9, %v2918_v22 }
0x14a0   :  { %2576 = vmatpush3.bf16.msra.mxu1 %v3609_v58  ;;  %2568 = vmatpush3.bf16.msra.mxu0 %v3641_v19 }
0x14a1   :  { %2577 = vmatprep.subr.bf16.mxu1 %v2918_v22  ;;  %2585 = vmatprep.subr.bf16.mxu0 %v2918_v22 }
0x14a4   :  { %2578 = vmatpush3.bf16.msra.mxu1 %v3621_v15 }
0x14a5   :  { %2579 = vmatprep.subr.bf16.mxu1 %v2918_v22 }
0x14a8   :  { %2580 = vmatpush3.bf16.msra.mxu1 %v3641_v19 }
0x14a9   :  { %2591 = vmatprep.subr.bf16.mxu1 %v2918_v22 }
0x14ab   :  { %v2686_v11 = vpop.permute.xlu0 %2685 }
0x14ac   :  { %v2687_v23 = vunpack.i.l.bf16 %v2686_v11  ;;  %v2688_v13 = vunpack.i.h.bf16 %v2686_v11 }
0x14b8   :  { %v3667_v59 = vpop.permute.xlu1 %1824  ;;  %v3677_v46 = vpop.permute.xlu0 %1829 }
0x1553   :  { %v1647_v60 = vpop.f32.mrf.mxu0 }
0x1554   :  { %v1722_v25 = vsel %vm1457_vm11, %v1647_v60, %v2687_v23 }
0x1555   :  { %v1724_v4 = vpack.c.bf16 %v1722_v25, %v1722_v25  ;;  %v2553_v9 = vpop.f32.mrf.mxu0 }
0x1557   :  { %2570 = vmatmul.mubr.msk.bf16.vlgmr.msra.gmra.mxu0 %vm214_vm1, %v1724_v4  ;;  %v1650_v34 = vpop.f32.mrf.mxu0 }
0x1558   :  { %2587 = vmatprep.mubr.msk.bf16.mxu0 %vm2919_vm9, %v2918_v22 }
0x1559   :  { %v2554_v30 = vpop.f32.mrf.mxu0 }
0x155b   :  { %v1708_v41 = vpop.f32.mrf.mxu1 }
0x155c   :  { %v1723_v17 = vsel %vm1457_vm11, %v1708_v41, %v2688_v13 }
0x155d   :  { %v1725_v26 = vpack.c.bf16 %v1723_v17, %v1723_v17  ;;  %v2559_v27 = vpop.f32.mrf.mxu1 }
0x155f   :  { %v1711_v29 = vpop.f32.mrf.mxu1  ;;  %2582 = vmatmul.mubr.msk.bf16.vlgmr.msra.gmra.mxu1 %vm214_vm1, %v1725_v26 }
0x1560   :  { %2593 = vmatprep.mubr.msk.bf16.mxu1 %vm2919_vm9, %v2918_v22 }
0x1561   :  { %v2560_v51 = vpop.f32.mrf.mxu1 }
0x1617   :  { %v1769_v61 = vpop.f32.mrf.mxu0 }
0x1618   :  { %v1770_v45 = vadd.f32 %v3664_v31, %v1769_v61 }
0x1619   :  { %v2571_v63 = vpop.f32.mrf.mxu0 }
0x161a   :  { %v1818_v52 = vmax.f32 %v1770_v45, 0.0 }
0x161b   :  { %v1772_v32 = vpop.f32.mrf.mxu0 }
0x161c   :  { %v1820_v33 = vadd.f32 %v1818_v52, %v3545_v62 }
0x161d   :  { %v2572_v36 = vpop.f32.mrf.mxu0 }
0x161e   :  { %v3671_v42 = vmul.f32 %v3667_v59, %v1820_v33 }
0x161f   :  { %v1812_v55 = vpop.f32.mrf.mxu1 }
0x1620   :  { %v1813_v2 = vadd.f32 %v3664_v31, %v1812_v55  ;;  %v1834_v28 = vpack.c.bf16 %v3671_v42, %v3671_v42 }
0x1621   :  { %v2583_v57 = vpop.f32.mrf.mxu1 }
0x1622   :  { %v1819_v0 = vmax.f32 %v1813_v2, 0.0  ;;  %v1837_v38 = vsel %vm1457_vm11, %v1834_v28, 0 }
0x1623   :  { %v1815_v44 = vpop.f32.mrf.mxu1  ;;  %2586 = vmatpush3.bf16.xpose.msra.mxu0 %v1837_v38 }
0x1624   :  { %v1821_v62 = vadd.f32 %v1819_v0, %v3551_v7  ;;  %2597 = vmatprep.subr.bf16.mxu0 %v2918_v22 }
0x1625   :  { %v2584_v43 = vpop.f32.mrf.mxu1 }
0x1626   :  { %v3682_v53 = vmul.f32 %v3677_v46, %v1821_v62 }
0x1628   :  { %v1835_v40 = vpack.c.bf16 %v3682_v53, %v3682_v53  ;;  %v2691_v28 = vpack.i.bf16 %v3682_v53, %v3671_v42 }
0x162a   :  { %2588 = vmatmul.mubr.msk.bf16.vlgmr.msra.gmra.mxu0 %vm1457_vm11, %v3557_v50  ;;  %v1880_v39 = vsel %vm1457_vm11, %v1835_v40, 0 }
0x162b   :  { %2592 = vmatpush3.bf16.xpose.msra.mxu1 %v1880_v39  ;;  %2598 = vmatpush3.bf16.msra.mxu0 %v3564_v5 }
0x162c   :  { %2603 = vmatprep.subr.bf16.mxu1 %v2918_v22  ;;  %2599 = vmatprep.mubr.msk.bf16.mxu0 %vm2919_vm9, %v2918_v22 }
0x162d   :  { %2609 = vmatprep.subr.bf16.mxu0 %v2918_v22 }
0x1632   :  { %2594 = vmatmul.mubr.msk.bf16.vlgmr.msra.gmra.mxu1 %vm1457_vm11, %v3572_v8 }
0x1633   :  { %2604 = vmatpush3.bf16.msra.mxu1 %v3578_v12  ;;  %2605 = vmatprep.mubr.msk.bf16.mxu1 %vm2919_vm9, %v2918_v22 }
0x1634   :  { %2621 = vmatprep.subr.bf16.mxu1 %v2918_v22 }
0x16ea   :  { %v1873_v7 = vpop.f32.mrf.mxu0 }
0x16eb   :  { %v1922_v50 = vsel %vm1550_vm12, %v1873_v7, -inf }
0x16ec   :  { %v1923_v5 = vrot.slane %v1922_v50, 4  ;;  %v2589_v24 = vpop.f32.mrf.mxu0 }
0x16ee   :  { %v1924_v47 = vmax.f32 %v1922_v50, %v1923_v5  ;;  %v1876_v1 = vpop.f32.mrf.mxu0 }
0x16f0   :  { %v1925_v35 = vrot.slane %v1924_v47, 2  ;;  %v2590_v37 = vpop.f32.mrf.mxu0 }
0x16f2   :  { %v1926_v48 = vmax.f32 %v1924_v47, %v1925_v35  ;;  %v1916_v56 = vpop.f32.mrf.mxu1 }
0x16f3   :  { %v1929_v8 = vsel %vm1550_vm12, %v1916_v56, -inf }
0x16f4   :  { %v1927_v54 = vrot.slane %v1926_v48, 1  ;;  %v1930_v12 = vrot.slane %v1929_v8, 4  ;;  %v2595_v3 = vpop.f32.mrf.mxu1 }
0x16f6   :  { %v1928_v6 = vmax.f32 %v1926_v48, %v1927_v54  ;;  %v1931_v14 = vmax.f32 %v1929_v8, %v1930_v12  ;;  %v1919_v10 = vpop.f32.mrf.mxu1  ;;  %v2228_v48 = vld [vmem:[%s3848_s8 + $0x50] sm:$0xff]  ;;  %v2226_v8 = vld [vmem:[%s3848_s8 + $0x40] sm:$0xff]  ;;  %v2227_v12 = vld [vmem:[%s3848_s8 + $0x48] sm:$0xff] }
0x16f7   :  { %v2234_v3 = vpack.c.bf16 %v2227_v12, %v2226_v8  ;;  %v2349_v8 = vld [vmem:[%s3849_s10] sm:$0xff] }
0x16f8   :  { %v1936_v16 = vsub.f32 %v1873_v7, %v1928_v6  ;;  %v1932_v18 = vrot.slane %v1931_v14, 2  ;;  %v2596_v20 = vpop.f32.mrf.mxu1  ;;  %v2224_v6 = vld [vmem:[%s3848_s8 + $0x30] sm:$0xff] }
0x16fa   :  { %v1938_v21 = vmul.f32 1.442695, %v1936_v16  ;;  %v1933_v11 = vmax.f32 %v1931_v14, %v1932_v18  ;;  %v2225_v14 = vld [vmem:[%s3848_s8 + $0x38] sm:$0xff]  ;;  %v2222_v16 = vld [vmem:[%s3848_s8 + $0x20] sm:$0xff]  ;;  %v2223_v18 = vld [vmem:[%s3848_s8 + $0x28] sm:$0xff] }
0x16fb   :  { %v2233_v10 = vpack.c.bf16 %v2225_v14, %v2224_v6  ;;  %v2232_v20 = vpack.c.bf16 %v2223_v18, %v2222_v16 }
0x16fc   :  { %2906 = vpow2.f32 %v1938_v21  ;;  %v1934_v23 = vrot.slane %v1933_v11, 1 }
0x16fe   :  { %v1935_v60 = vmax.f32 %v1933_v11, %v1934_v23 }
0x1700   :  { %v1937_v25 = vsub.f32 %v1916_v56, %v1935_v60  ;;  %v2229_v56 = vld [vmem:[%s3848_s8 + $0x58] sm:$0xff] }
0x1701   :  { %v2235_v54 = vpack.c.bf16 %v2229_v56, %v2228_v48  ;;  %v2352_v48 = vld [vmem:[%s3849_s10 + $0x18] sm:$0xff] }
0x1702   :  { %v1940_v4 = vmul.f32 1.442695, %v1937_v25 }
0x1704   :  { %2908 = vpow2.f32 %v1940_v4  ;;  %v2220_v4 = vld [vmem:[%s3848_s8 + $0x10] sm:$0xff] }
0x1709   :  { %v2907_v9 = vpop.eup %2906 }
0x170a   :  { %v1942_v34 = vsel %vm1550_vm12, %v2907_v9, 0.0 }
0x170b   :  { %v1943_v30 = vrot.slane %v1942_v34, 4 }
0x170d   :  { %v1944_v13 = vadd.f32 %v1943_v30, %v1942_v34 }
0x170f   :  { %v1945_v41 = vrot.slane %v1944_v13, 2 }
0x1711   :  { %v2909_v17 = vpop.eup %2908  ;;  %v1946_v26 = vadd.f32 %v1945_v41, %v1944_v13 }
0x1712   :  { %v1949_v27 = vsel %vm1550_vm12, %v2909_v17, 0.0 }
0x1713   :  { %v1947_v29 = vrot.slane %v1946_v26, 1  ;;  %v1950_v51 = vrot.slane %v1949_v27, 4 }
0x1715   :  { %v1948_v61 = vadd.f32 %v1947_v29, %v1946_v26  ;;  %v1951_v45 = vadd.f32 %v1950_v51, %v1949_v27  ;;  %v2218_v26 = vld [vmem:[%s3848_s8] sm:$0xff]  ;;  %v2219_v27 = vld [vmem:[%s3848_s8 + $0x8] sm:$0xff] }
0x1716   :  { %v2230_v51 = vpack.c.bf16 %v2219_v27, %v2218_v26 }
0x1717   :  { %v1952_v63 = vrot.slane %v1951_v45, 2  ;;  %2910 = vrcp.f32 %v1948_v61 }
0x1719   :  { %v1953_v52 = vadd.f32 %v1952_v63, %v1951_v45 }
0x171b   :  { %v1954_v32 = vrot.slane %v1953_v52, 1 }
0x171d   :  { %v1955_v33 = vadd.f32 %v1954_v32, %v1953_v52 }
0x171f   :  { %2912 = vrcp.f32 %v1955_v33 }
0x1724   :  { %v2911_v36 = vpop.eup %2910 }
0x1725   :  { %v1958_v55 = vmul.f32 %v2911_v36, %v2907_v9  ;;  %v2221_v9 = vld [vmem:[%s3848_s8 + $0x18] sm:$0xff] }
0x1726   :  { %v2231_v30 = vpack.c.bf16 %v2221_v9, %v2220_v4 }
0x1727   :  { %v1960_v2 = vpack.c.bf16 %v1958_v55, %v1958_v55 }
0x1729   :  { %1962 = vxpose.xlu1.c.b16.start.end [1/1] (short) (narrow) %v1960_v2, 16 }
0x172c   :  { %v2913_v57 = vpop.eup %2912 }
0x172d   :  { %2692 = vrot.lane.b32.xlu1 %v2691_v28, %s2922_s19  ;;  %v1959_v0 = vmul.f32 %v2913_v57, %v2909_v17 }
0x172f   :  { %v1961_v38 = vpack.c.bf16 %v1959_v0, %v1959_v0 }
0x1731   :  { %2021 = vxpose.xlu0.c.b16.start.end [1/1] (short) (narrow) %v1961_v38, 16 }
0x178b   :  { %v1970_v44 = vpop.trf.xlu1 }
0x178c   :  { %2600 = vmatmul.mubr.msk.bf16.vlgmr.msra.gmra.mxu0 %vm1607_vm13, %v1970_v44 }
0x178d   :  { %2610 = vmatpush3.bf16.msra.mxu0 %v3599_v49  ;;  %2617 = vmatprep.mubr.msk.bf16.mxu0 %vm2919_vm9, %v2918_v22 }
0x178e   :  { %2611 = vmatprep.subr.bf16.mxu0 %v2918_v22 }
0x1791   :  { %2612 = vmatpush3.bf16.msra.mxu0 %v3609_v58 }
0x1792   :  { %2613 = vmatprep.subr.bf16.mxu0 %v2918_v22 }
0x1793   :  { %v2029_v62 = vpop.trf.xlu0 }
0x1794   :  { %2606 = vmatmul.mubr.msk.bf16.vlgmr.msra.gmra.mxu1 %vm1607_vm13, %v2029_v62 }
0x1795   :  { %2614 = vmatpush3.bf16.msra.mxu0 %v3621_v15  ;;  %2622 = vmatpush3.bf16.msra.mxu1 %v3599_v49 }
0x1796   :  { %2615 = vmatprep.subr.bf16.mxu0 %v2918_v22  ;;  %2623 = vmatprep.subr.bf16.mxu1 %v2918_v22 }
0x1797   :  { %2629 = vmatprep.mubr.msk.bf16.mxu1 %vm2919_vm9, %v2918_v22 }
0x1799   :  { %2616 = vmatpush3.bf16.msra.mxu0 %v3641_v19  ;;  %2624 = vmatpush3.bf16.msra.mxu1 %v3609_v58 }
0x179a   :  { %2625 = vmatprep.subr.bf16.mxu1 %v2918_v22  ;;  %2633 = vmatprep.subr.bf16.mxu0 %v2918_v22 }
0x179d   :  { %2626 = vmatpush3.bf16.msra.mxu1 %v3621_v15 }
0x179e   :  { %2627 = vmatprep.subr.bf16.mxu1 %v2918_v22 }
0x179f   :  { %v2693_v49 = vpop.permute.xlu1 %2692 }
0x17a0   :  { %v2694_v43 = vunpack.i.l.bf16 %v2693_v49  ;;  %v2695_v5 = vunpack.i.h.bf16 %v2693_v49 }
0x17a1   :  { %2628 = vmatpush3.bf16.msra.mxu1 %v3641_v19 }
0x17a2   :  { %2649 = vmatprep.subr.bf16.mxu1 %v2918_v22 }
0x184c   :  { %v2015_v40 = vpop.f32.mrf.mxu0 }
0x184d   :  { %v2088_v39 = vsel %vm1457_vm11, %v2015_v40, %v2694_v43 }
0x184e   :  { %v2090_v7 = vpack.c.bf16 %v2088_v39, %v2088_v39  ;;  %v2601_v50 = vpop.f32.mrf.mxu0 }
0x1850   :  { %2618 = vmatmul.mubr.msk.bf16.vlgmr.msra.gmra.mxu0 %vm214_vm1, %v2090_v7  ;;  %v2018_v58 = vpop.f32.mrf.mxu0 }
0x1851   :  { %2645 = vmatprep.mubr.msk.bf16.mxu0 %vm2919_vm9, %v2918_v22  ;;  %2634 = vmatpush3.bf16.msra.mxu0 %v2235_v54 }
0x1852   :  { %v2602_v15 = vpop.f32.mrf.mxu0  ;;  %2635 = vmatprep.subr.bf16.mxu0 %v2918_v22 }
0x1854   :  { %v2074_v24 = vpop.f32.mrf.mxu1 }
0x1855   :  { %v2089_v19 = vsel %vm1457_vm11, %v2074_v24, %v2695_v5  ;;  %2636 = vmatpush3.bf16.msra.mxu0 %v2234_v3  ;;  %v2355_v5 = vld [vmem:[%s3849_s10 + $0x30] sm:$0x3] }
0x1856   :  { %v2091_v47 = vpack.c.bf16 %v2089_v19, %v2089_v19  ;;  %v2607_v1 = vpop.f32.mrf.mxu1  ;;  %2637 = vmatprep.subr.bf16.mxu0 %v2918_v22  ;;  %v2359_v24 = vpack.c.bf16 %v2355_v5, %v2355_v5 }
0x1857   :  { %v2354_v1 = vld [vmem:[%s3849_s10 + $0x28] sm:$0xff] }
0x1858   :  { %v2077_v35 = vpop.f32.mrf.mxu1  ;;  %2630 = vmatmul.mubr.msk.bf16.vlgmr.msra.gmra.mxu1 %vm214_vm1, %v2091_v47  ;;  %v2377_v19 = vsel %vm1326_vm2, %v2359_v24, 0  ;;  %v2353_v47 = vld [vmem:[%s3849_s10 + $0x20] sm:$0xff] }
0x1859   :  { %2661 = vmatprep.mubr.msk.bf16.mxu1 %vm2919_vm9, %v2918_v22  ;;  %2650 = vmatpush3.bf16.msra.mxu1 %v2235_v54  ;;  %v2358_v35 = vpack.c.bf16 %v2354_v1, %v2353_v47  ;;  %v2350_v54 = vld [vmem:[%s3849_s10 + $0x8] sm:$0xff] }
0x185a   :  { %v2608_v37 = vpop.f32.mrf.mxu1  ;;  %2651 = vmatprep.subr.bf16.mxu1 %v2918_v22  ;;  %2638 = vmatpush3.bf16.msra.mxu0 %v2233_v10  ;;  %v2356_v12 = vpack.c.bf16 %v2350_v54, %v2349_v8 }
0x185b   :  { %2639 = vmatprep.subr.bf16.mxu0 %v2918_v22  ;;  %v2351_v37 = vld [vmem:[%s3849_s10 + $0x10] sm:$0xff] }
0x185c   :  { %v2357_v56 = vpack.c.bf16 %v2352_v48, %v2351_v37 }
0x185d   :  { %2652 = vmatpush3.bf16.msra.mxu1 %v2234_v3  ;;  %v2477_v3 = vld [vmem:[%s3850_s9] ss:$0 sm:$0xff] }
0x185e   :  { %2653 = vmatprep.subr.bf16.mxu1 %v2918_v22  ;;  %2640 = vmatpush3.bf16.msra.mxu0 %v2232_v20 }
0x185f   :  { %2641 = vmatprep.subr.bf16.mxu0 %v2918_v22 }
0x1861   :  { %2654 = vmatpush3.bf16.msra.mxu1 %v2233_v10 }
0x1862   :  { %2655 = vmatprep.subr.bf16.mxu1 %v2918_v22  ;;  %2642 = vmatpush3.bf16.msra.mxu0 %v2231_v30 }
0x1863   :  { %2643 = vmatprep.subr.bf16.mxu0 %v2918_v22 }
0x1865   :  { %2656 = vmatpush3.bf16.msra.mxu1 %v2232_v20 }
0x1866   :  { %2657 = vmatprep.subr.bf16.mxu1 %v2918_v22  ;;  %2644 = vmatpush3.bf16.msra.mxu0 %v2230_v51 }
0x1867   :  { %2665 = vmatprep.subr.bf16.mxu0 %v2918_v22 }
0x1869   :  { %2658 = vmatpush3.bf16.msra.mxu1 %v2231_v30 }
0x186a   :  { %2659 = vmatprep.subr.bf16.mxu1 %v2918_v22 }
0x186d   :  { %2660 = vmatpush3.bf16.msra.mxu1 %v2230_v51 }
0x1910   :  { %v2129_v21 = vpop.f32.mrf.mxu0 }
0x1911   :  { %v2130_v11 = vadd.f32 %v3664_v31, %v2129_v21 }
0x1912   :  { %v2619_v23 = vpop.f32.mrf.mxu0 }
0x1913   :  { %v2178_v60 = vmax.f32 %v2130_v11, 0.0 }
0x1914   :  { %v2132_v25 = vpop.f32.mrf.mxu0 }
0x1915   :  { %v2180_v13 = vadd.f32 %v2178_v60, %v3671_v42 }
0x1916   :  { %v2620_v34 = vpop.f32.mrf.mxu0 }
0x1917   :  { %v2182_v42 = vmul.f32 %v2180_v13, %v3667_v59 }
0x1918   :  { %v2172_v41 = vpop.f32.mrf.mxu1 }
0x1919   :  { %v2173_v17 = vadd.f32 %v3664_v31, %v2172_v41  ;;  %v2192_v32 = vrot.slane %v2182_v42, 1  ;;  %v2186_v28 = vrot.slane %v2182_v42, 7 }
0x191a   :  { %v2631_v29 = vpop.f32.mrf.mxu1 }
0x191b   :  { %v2179_v61 = vmax.f32 %v2173_v17, 0.0  ;;  %v2196_v55 = vsel %vm1344_vm8, %v2192_v32, 0.0 }
0x191c   :  { %v2175_v45 = vpop.f32.mrf.mxu1 }
0x191d   :  { %v2181_v31 = vadd.f32 %v2179_v61, %v3682_v53 }
0x191e   :  { %v2632_v63 = vpop.f32.mrf.mxu1 }
0x191f   :  { %v2183_v52 = vmul.f32 %v2181_v31, %v3677_v46  ;;  %v2190_v46 = vsel %vm1326_vm2, 0.0, %v2186_v28 }
0x1921   :  { %v2696_v33 = vpack.i.bf16 %v2183_v52, %v2182_v42  ;;  %v2193_v36 = vrot.slane %v2183_v52, 1  ;;  %v2187_v53 = vrot.slane %v2183_v52, 7 }
0x1923   :  { %2697 = vrot.lane.b32.xlu0 %v2696_v33, %s2922_s19  ;;  %v2197_v59 = vsel %vm1344_vm8, %v2193_v36, 0.0  ;;  %v2191_v62 = vsel %vm1326_vm2, 0.0, %v2187_v53 }
0x1924   :  { %v2701_v2 = vpack.i.bf16 %v2197_v59, %v2196_v55  ;;  %v2480_v55 = vld [vmem:[%s3851_s11] ss:$0 sm:$0xff] }
0x1926   :  { %2702 = vrot.lane.b32.xlu1 %v2701_v2, %s2917_s28 }
0x1995   :  { %v2698_v57 = vpop.permute.xlu0 %2697 }
0x1996   :  { %v2700_v0 = vunpack.i.h.bf16 %v2698_v57  ;;  %v2699_v38 = vunpack.i.l.bf16 %v2698_v57 }
0x1998   :  { %v2703_v44 = vpop.permute.xlu1 %2702  ;;  %v2212_v40 = vsel %vm1457_vm11, %v2190_v46, %v2699_v38  ;;  %v2213_v39 = vsel %vm1457_vm11, %v2191_v62, %v2700_v0 }
0x1999   :  { %v2705_v49 = vunpack.i.h.bf16 %v2703_v44  ;;  %v2704_v43 = vunpack.i.l.bf16 %v2703_v44 }
0x199b   :  { %v2214_v7 = vsel %vm214_vm1, %v2212_v40, %v2704_v43  ;;  %v2215_v50 = vsel %vm214_vm1, %v2213_v39, %v2705_v49  ;;  %vm2419_vm1 = vcmask 17408  }
0x199c   :  { %v2216_v58 = vpack.c.bf16 %v2214_v7, %v2214_v7  ;;  %v2217_v15 = vpack.c.bf16 %v2215_v50, %v2215_v50 }
0x199e   :  { %2646 = vmatmul.mubr.msk.bf16.vlgmr.msra.gmra.mxu0 %vm2243_vm14, %v2216_v58  ;;  %2662 = vmatmul.mubr.msk.bf16.vlgmr.msra.gmra.mxu1 %vm2243_vm14, %v2217_v15 }
0x199f   :  { %2673 = vmatprep.mubr.msk.bf16.mxu0 %vm2919_vm9, %v2918_v22  ;;  %2666 = vmatpush3.bf16.msra.mxu0 %v2377_v19 }
0x19a0   :  { %2667 = vmatprep.subr.bf16.mxu0 %v2918_v22 }
0x19a3   :  { %2668 = vmatpush3.bf16.msra.mxu0 %v2358_v35 }
0x19a4   :  { %2669 = vmatprep.subr.bf16.mxu0 %v2918_v22 }
0x19a7   :  { %2670 = vmatpush3.bf16.msra.mxu0 %v2357_v56 }
0x19a8   :  { %2671 = vmatprep.subr.bf16.mxu0 %v2918_v22 }
0x19ab   :  { %2672 = vmatpush3.bf16.msra.mxu0 %v2356_v12 }
0x1a5e   :  { %v2281_v6 = vpop.f32.mrf.mxu0  ;;  %v2324_v14 = vpop.f32.mrf.mxu1 }
0x1a5f   :  { %v2282_v10 = vadd.f32 %v2477_v3, %v2281_v6  ;;  %v2325_v16 = vadd.f32 %v2477_v3, %v2324_v14 }
0x1a60   :  { %v2647_v22 = vpop.f32.mrf.mxu0  ;;  %v2663_v18 = vpop.f32.mrf.mxu1 }
0x1a61   :  { %v2330_v20 = vmax.f32 %v2282_v10, 0.0  ;;  %v2331_v21 = vmax.f32 %v2325_v16, 0.0 }
0x1a62   :  { %v2284_v11 = vpop.f32.mrf.mxu0  ;;  %v2327_v23 = vpop.f32.mrf.mxu1 }
0x1a63   :  { %v2333_v60 = vsel %vm2332_vm15, %v2330_v20, -inf  ;;  %v2340_v25 = vsel %vm2332_vm15, %v2331_v21, -inf }
0x1a64   :  { %v2334_v4 = vrot.slane %v2333_v60, 4  ;;  %v2341_v9 = vrot.slane %v2340_v25, 4  ;;  %v2648_v34 = vpop.f32.mrf.mxu0  ;;  %v2664_v30 = vpop.f32.mrf.mxu1 }
0x1a66   :  { %v2335_v13 = vmax.f32 %v2333_v60, %v2334_v4  ;;  %v2342_v41 = vmax.f32 %v2340_v25, %v2341_v9 }
0x1a68   :  { %v2336_v17 = vrot.slane %v2335_v13, 2  ;;  %v2343_v26 = vrot.slane %v2342_v41, 2 }
0x1a6a   :  { %v2337_v27 = vmax.f32 %v2335_v13, %v2336_v17  ;;  %v2344_v29 = vmax.f32 %v2342_v41, %v2343_v26 }
0x1a6c   :  { %v2338_v51 = vrot.slane %v2337_v27, 1  ;;  %v2345_v42 = vrot.slane %v2344_v29, 1 }
0x1a6e   :  { %v2339_v61 = vmax.f32 %v2337_v27, %v2338_v51  ;;  %v2346_v45 = vmax.f32 %v2344_v29, %v2345_v42 }
0x1a70   :  { %v2347_v31 = vpack.c.bf16 %v2339_v61, %v2339_v61  ;;  %v2348_v63 = vpack.c.bf16 %v2346_v45, %v2346_v45 }
0x1a72   :  { %v2369_v52 = vunpack.c.l.b16 %v2347_v31  ;;  %v2370_v32 = vunpack.c.l.b16 %v2348_v63 }
0x1a74   :  { %v2371_v33 = vsel %vm342_vm0, %v2370_v32, %v2369_v52 }
0x1a75   :  { %v2372_v36 = vpack.c.b16 %v2371_v33, %v2371_v33 }
0x1a77   :  { %2674 = vmatmul.mubr.msk.bf16.vlgmr.msra.gmra.mxu0 %vm2332_vm15, %v2372_v36 }
0x1b37   :  { %v2413_v59 = vpop.f32.mrf.mxu0 }
0x1b38   :  { %v2414_v2 = vadd.f32 %v2480_v55, %v2413_v59 }
0x1b39   :  { %v2675_v28 = vpop.f32.mrf.mxu0 }
0x1b3a   :  { %2420 = vst.msk [vmem:[%s3852_s12] sm:$0x3] %vm2419_vm1, %v2414_v2 }
0x1b3b   :  { %v2416_v57 = vpop.f32.mrf.mxu0 }
0x1b3d   :  { %v2676_v53 = vpop.f32.mrf.mxu0 }

</bundles_post_ra>
